<compile_context>
chip_gen: v6e
topology: v6e:2x2x1
jax: 0.10.0
libtpu: 0.0.40
codegen_flags: <defaults>
</compile_context>

<pallas_src>
import functools

import jax
import jax.numpy as jnp
from jax import lax
from jax.experimental import pallas as pl
from jax.experimental.pallas import tpu as pltpu
import numpy as np

LANES = 128


def _multibox_loss_kernel(conf_ref, ploc_ref, labels_ref, gloc_ref, out_ref,
                          mrows_ref, wrows_ref, *, neg_pos_ratio, num_real,
                          inner_unroll, outer_unroll):
    conf = conf_ref[0]                       # (C, R, 128) f32
    labels = labels_ref[0]                   # (R, 128) int32
    C, R, L = conf.shape

    # ---- log-softmax over classes ----------------------------------------
    # C is the leading axis, so max/sum are elementwise combines of C
    # lane-dense (R, 128) slabs (VPU) and exp/log run full-width (EUP).
    m = jnp.max(conf, axis=0, keepdims=True)
    shifted = conf - m
    lse = jnp.log(jnp.sum(jnp.exp(shifted), axis=0, keepdims=True))
    log_probs = shifted - lse                # (C, R, 128)
    bg_loss = -log_probs[0]                  # (R, 128)

    # ---- masks -------------------------------------------------------------
    row_i = lax.broadcasted_iota(jnp.int32, (R, L), 0)
    lane_i = lax.broadcasted_iota(jnp.int32, (R, L), 1)
    flat_idx = row_i * L + lane_i            # original prior index
    valid = flat_idx < num_real              # False on padded priors
    valid_f = valid.astype(jnp.float32)
    pos_mask = (labels > 0) & valid
    pos_f = pos_mask.astype(jnp.float32)
    num_pos = jnp.sum(pos_f)                 # per-batch positives (exact in f32)
    num_neg = num_pos * neg_pos_ratio

    neg_inf = jnp.float32(-jnp.inf)
    # Positives and padded priors are excluded from negative mining.
    mined = jnp.where(pos_mask | jnp.logical_not(valid), neg_inf, bg_loss)

    # ---- per-prior NLL at the target class (mask applied later) -----------
    cls_iota = lax.broadcasted_iota(jnp.int32, (C, R, L), 0)
    one_hot = (cls_iota == labels[None, :, :]).astype(jnp.float32)
    nll = -jnp.sum(log_probs * one_hot, axis=0)            # (R, 128)

    # Positive part of the classification loss can be summed immediately;
    # the mined-negative part is gathered row by row below.
    cls_pos_sum = jnp.sum(nll * pos_f)
    w_neg = nll * valid_f * (1.0 - pos_f)                  # weight if selected as negative

    # Stage the 128-wide prior rows into leading-dim scratch so the mining
    # loops only need dynamic indexing on the (untiled) leading axis.
    for r in range(R):                                     # R is a static int
        mrows_ref[r] = mined[r:r + 1, :]
        wrows_ref[r] = w_neg[r:r + 1, :]

    # ---- hard-negative mining: tiled pairwise stable rank ------------------
    # rank[i] = #{j : mined[j] > mined[i]} + #{j : mined[j] == mined[i], j < i}
    # (== position in a stable descending sort, identical to double argsort).
    lane_iota = lax.broadcasted_iota(jnp.int32, (1, L), 1)   # (1, 128)
    sub_iota = lax.broadcasted_iota(jnp.int32, (L, L), 0)    # (128, 128)

    def outer(ri, neg_acc):                                  # neg_acc: (1, 128) f32
        li_row = mrows_ref[ri]                                      # (1, 128)
        # i values with the i-lane index on sublanes, replicated along lanes.
        li_full = jnp.transpose(jnp.broadcast_to(li_row, (L, L)))   # [a,b] = mined[ri, a]
        ii_full = ri * L + sub_iota                                 # [a,b] = flat idx of i

        def inner(rj, acc):
            lj_row = mrows_ref[rj]                                  # (1, 128)
            jj_row = rj * L + lane_iota
            gt = lj_row > li_full
            tie = (lj_row == li_full) & (jj_row < ii_full)
            return acc + (gt | tie).astype(jnp.float32)             # pure VPU adds

        acc = lax.fori_loop(0, R, inner, jnp.zeros((L, L), jnp.float32),
                            unroll=inner_unroll)
        # rank(i=(ri, a)) = sum_b acc[a, b]; transpose once (XLU) so the reduce
        # runs over sublanes and the result is lane-indexed.
        rank_row = jnp.sum(jnp.transpose(acc), axis=0, keepdims=True)   # (1, 128)
        neg_row = (rank_row < num_neg).astype(jnp.float32)
        return neg_acc + wrows_ref[ri] * neg_row

    neg_acc = lax.fori_loop(0, R, outer, jnp.zeros((1, L), jnp.float32),
                            unroll=outer_unroll)
    cls_sum = cls_pos_sum + jnp.sum(neg_acc)

    # ---- smooth L1 (beta = 1.0) on positive priors, lane-dense --------------
    diff = ploc_ref[0] - gloc_ref[0]                        # (4, R, 128)
    ad = jnp.abs(diff)
    sl1 = jnp.where(ad < 1.0, 0.5 * ad * ad, ad - 0.5)
    sl1_sum = jnp.sum(sl1 * pos_f[None, :, :])

    # ---- pack per-batch partial sums into one (8, 128) output slab ---------
    sub = lax.broadcasted_iota(jnp.int32, (1, 8, L), 1)
    out_ref[...] = jnp.where(sub == 0, sl1_sum,
                    jnp.where(sub == 1, cls_sum,
                     jnp.where(sub == 2, num_pos, 0.0)))


def multibox_loss(confidence, predicted_locations, labels, gt_locations,
                  neg_pos_ratio=3):
    """Pallas implementation of MultiBoxLoss.forward. Returns (smooth_l1, cls)."""
    B, P, C = confidence.shape
    R = (P + LANES - 1) // LANES
    Pp = R * LANES
    pad = Pp - P

    conf = jnp.pad(confidence.astype(jnp.float32), ((0, 0), (0, pad), (0, 0)))
    ploc = jnp.pad(predicted_locations.astype(jnp.float32), ((0, 0), (0, pad), (0, 0)))
    gloc = jnp.pad(gt_locations.astype(jnp.float32), ((0, 0), (0, pad), (0, 0)))
    lbls = jnp.pad(labels.astype(jnp.int32), ((0, 0), (0, pad)))

    # Prior axis onto lanes (layout plumbing done outside the kernel).
    conf_t = jnp.transpose(conf, (0, 2, 1)).reshape(B, C, R, LANES)
    ploc_t = jnp.transpose(ploc, (0, 2, 1)).reshape(B, 4, R, LANES)
    gloc_t = jnp.transpose(gloc, (0, 2, 1)).reshape(B, 4, R, LANES)
    lbls_r = lbls.reshape(B, R, LANES)

    kernel = functools.partial(
        _multibox_loss_kernel,
        neg_pos_ratio=neg_pos_ratio, num_real=P,
        # Unroll the mining loops when their trip count is small so the LLO
        # scheduler sees the whole body; fall back to rolled loops otherwise.
        inner_unroll=bool(R <= 16), outer_unroll=bool(R <= 4))

    parts = pl.pallas_call(
        kernel,
        out_shape=jax.ShapeDtypeStruct((B, 8, LANES), jnp.float32),
        grid=(B,),
        in_specs=[
            pl.BlockSpec((1, C, R, LANES), lambda b: (b, 0, 0, 0)),
            pl.BlockSpec((1, 4, R, LANES), lambda b: (b, 0, 0, 0)),
            pl.BlockSpec((1, R, LANES), lambda b: (b, 0, 0)),
            pl.BlockSpec((1, 4, R, LANES), lambda b: (b, 0, 0, 0)),
        ],
        out_specs=pl.BlockSpec((1, 8, LANES), lambda b: (b, 0, 0)),
        scratch_shapes=[
            pltpu.VMEM((R, 1, LANES), jnp.float32),   # mined rows
            pltpu.VMEM((R, 1, LANES), jnp.float32),   # negative-NLL weight rows
        ],
        compiler_params=pltpu.CompilerParams(
            dimension_semantics=("parallel",),        # shard batch over cores (v7x)
            vmem_limit_bytes=32 * 1024 * 1024),
    )(conf_t, ploc_t, lbls_r, gloc_t)

    sl1_sum = jnp.sum(parts[:, 0, 0])
    cls_sum = jnp.sum(parts[:, 1, 0])
    num_pos = jnp.sum(parts[:, 2, 0])
    # Guard the degenerate no-positive case (the PyTorch module would NaN).
    n = jnp.maximum(num_pos, 1.0)
    return sl1_sum / n, cls_sum / n


def _reference(confidence, predicted_locations, labels, gt_locations,
               neg_pos_ratio=3):
    """Pure-JAX reference mirroring the PyTorch module (double argsort)."""
    logp = jax.nn.log_softmax(confidence, axis=2)
    loss = -logp[:, :, 0]
    pos_mask = labels > 0
    num_pos = jnp.sum(pos_mask.astype(jnp.int32), axis=1, keepdims=True)
    num_neg = num_pos * neg_pos_ratio
    loss = jnp.where(pos_mask, -jnp.inf, loss)
    indexes = jnp.argsort(-loss, axis=1)           # stable
    orders = jnp.argsort(indexes, axis=1)
    neg_mask = orders < num_neg
    mask = pos_mask | neg_mask

    C = confidence.shape[2]
    one_hot = jax.nn.one_hot(labels, C, dtype=jnp.float32)
    nll = -jnp.sum(logp * one_hot, axis=2)
    cls_sum = jnp.sum(jnp.where(mask, nll, 0.0))

    diff = predicted_locations - gt_locations
    ad = jnp.abs(diff)
    sl1 = jnp.where(ad < 1.0, 0.5 * ad * ad, ad - 0.5)
    sl1_sum = jnp.sum(jnp.sum(sl1, axis=2) * pos_mask.astype(jnp.float32))

    n = jnp.sum(pos_mask.astype(jnp.float32))
    return sl1_sum / n, cls_sum / n


if __name__ == "__main__":
    B, P, C = 2, 200, 8          # batch, num_priors (padded to 256 -> R=2), classes
    NEG_POS_RATIO = 3

    key = jax.random.PRNGKey(0)
    k1, k2, k3, k4, k5 = jax.random.split(key, 5)
    confidence = jax.random.normal(k1, (B, P, C), dtype=jnp.float32)
    pred_locs = jax.random.normal(k2, (B, P, 4), dtype=jnp.float32)
    gt_locs = jax.random.normal(k3, (B, P, 4), dtype=jnp.float32)
    # ~10% positive priors so the hard-negative mining boundary is exercised.
    is_pos = jax.random.bernoulli(k4, 0.1, (B, P))
    pos_cls = jax.random.randint(k5, (B, P), 1, C, dtype=jnp.int32)
    labels = jnp.where(is_pos, pos_cls, 0).astype(jnp.int32)

    sl1, cls = multibox_loss(confidence, pred_locs, labels, gt_locs,
                             neg_pos_ratio=NEG_POS_RATIO)
    jax.block_until_ready((sl1, cls))

    sl1_ref, cls_ref = _reference(confidence, pred_locs, labels, gt_locs,
                                  neg_pos_ratio=NEG_POS_RATIO)
    np.testing.assert_allclose(np.asarray(sl1), np.asarray(sl1_ref),
                               rtol=1e-4, atol=1e-4)
    np.testing.assert_allclose(np.asarray(cls), np.asarray(cls_ref),
                               rtol=1e-4, atol=1e-4)

    print("KERNEL_OK")
</pallas_src>

<mosaic_0001>
module attributes {stable_mosaic.version = 11 : i64} {
  func.func @_multibox_loss_kernel(%arg0: i32, %arg1: memref<1x8x2x128xf32, #tpu.memory_space<vmem>>, %arg2: memref<1x4x2x128xf32, #tpu.memory_space<vmem>>, %arg3: memref<1x2x128xi32, #tpu.memory_space<vmem>>, %arg4: memref<1x4x2x128xf32, #tpu.memory_space<vmem>>, %arg5: memref<1x8x128xf32, #tpu.memory_space<vmem>>, %arg6: memref<2x1x128xf32, #tpu.memory_space<vmem>>, %arg7: memref<2x1x128xf32, #tpu.memory_space<vmem>>) attributes {dimension_semantics = [#tpu.dimension_semantics<parallel>], iteration_bounds = array<i64: 2>, scalar_prefetch = 0 : i64, scratch_operands = 2 : i64, tpu.core_type = #tpu.core_type<tc>, window_params = [{transform_indices = @transform_0, window_bounds = array<i64: 1, 8, 2, 128>}, {transform_indices = @transform_1, window_bounds = array<i64: 1, 4, 2, 128>}, {transform_indices = @transform_2, window_bounds = array<i64: 1, 2, 128>}, {transform_indices = @transform_3, window_bounds = array<i64: 1, 4, 2, 128>}, {transform_indices = @transform_4, window_bounds = array<i64: 1, 8, 128>}]} {
    %c0 = arith.constant 0 : index
    %c0_0 = arith.constant 0 : index
    %c0_1 = arith.constant 0 : index
    %c0_2 = arith.constant 0 : index
    %0 = vector.load %arg1[%c0, %c0_0, %c0_1, %c0_2] : memref<1x8x2x128xf32, #tpu.memory_space<vmem>>, vector<1x8x2x128xf32>
    %1 = vector.shape_cast %0 : vector<1x8x2x128xf32> to vector<8x2x128xf32>
    %c0_3 = arith.constant 0 : index
    %c0_4 = arith.constant 0 : index
    %c0_5 = arith.constant 0 : index
    %2 = vector.load %arg3[%c0_3, %c0_4, %c0_5] : memref<1x2x128xi32, #tpu.memory_space<vmem>>, vector<1x2x128xi32>
    %3 = vector.shape_cast %2 : vector<1x2x128xi32> to vector<2x128xi32>
    %cst = arith.constant dense<0xFF800000> : vector<2x128xf32>
    %4 = vector.multi_reduction <maximumf>, %1, %cst [0] : vector<8x2x128xf32> to vector<2x128xf32>
    %5 = vector.shape_cast %4 : vector<2x128xf32> to vector<1x2x128xf32>
    %6 = vector.broadcast %5 : vector<1x2x128xf32> to vector<8x2x128xf32>
    %7 = arith.subf %1, %6 : vector<8x2x128xf32>
    %8 = math.exp %7 : vector<8x2x128xf32>
    %cst_6 = arith.constant dense<0.000000e+00> : vector<2x128xf32>
    %9 = vector.multi_reduction <add>, %8, %cst_6 [0] : vector<8x2x128xf32> to vector<2x128xf32>
    %10 = vector.shape_cast %9 : vector<2x128xf32> to vector<1x2x128xf32>
    %11 = math.log %10 : vector<1x2x128xf32>
    %12 = vector.broadcast %11 : vector<1x2x128xf32> to vector<8x2x128xf32>
    %13 = arith.subf %7, %12 : vector<8x2x128xf32>
    %14 = vector.extract_strided_slice %13 {offsets = [0, 0, 0], sizes = [1, 2, 128], strides = [1, 1, 1]} : vector<8x2x128xf32> to vector<1x2x128xf32>
    %15 = vector.shape_cast %14 : vector<1x2x128xf32> to vector<2x128xf32>
    %cst_7 = arith.constant 0.000000e+00 : f32
    %16 = vector.broadcast %cst_7 : f32 to vector<2x128xf32>
    %17 = arith.subf %16, %15 : vector<2x128xf32>
    %18 = tpu.iota {dimensions = array<i32: 0>} : vector<2x128xi32>
    %19 = tpu.iota {dimensions = array<i32: 1>} : vector<2x128xi32>
    %c128_i32 = arith.constant 128 : i32
    %20 = vector.broadcast %c128_i32 : i32 to vector<2x128xi32>
    %21 = arith.muli %18, %20 : vector<2x128xi32>
    %22 = arith.addi %21, %19 : vector<2x128xi32>
    %c200_i32 = arith.constant 200 : i32
    %23 = vector.broadcast %c200_i32 : i32 to vector<2x128xi32>
    %24 = arith.cmpi slt, %22, %23 : vector<2x128xi32>
    %25 = arith.extui %24 : vector<2x128xi1> to vector<2x128xi32>
    %26 = arith.sitofp %25 : vector<2x128xi32> to vector<2x128xf32>
    %c0_i32 = arith.constant 0 : i32
    %27 = vector.broadcast %c0_i32 : i32 to vector<2x128xi32>
    %28 = arith.cmpi sgt, %3, %27 : vector<2x128xi32>
    %29 = arith.andi %28, %24 : vector<2x128xi1>
    %30 = arith.extui %29 : vector<2x128xi1> to vector<2x128xi32>
    %31 = arith.sitofp %30 : vector<2x128xi32> to vector<2x128xf32>
    %32 = vector.shape_cast %31 : vector<2x128xf32> to vector<1x2x128xf32>
    %cst_8 = arith.constant dense<0.000000e+00> : vector<1xf32>
    %33 = vector.multi_reduction <add>, %32, %cst_8 [1, 2] : vector<1x2x128xf32> to vector<1xf32>
    %34 = vector.shape_cast %33 : vector<1xf32> to vector<1x1x1xf32>
    %35 = vector.extract %34[0, 0, 0] : f32 from vector<1x1x1xf32>
    %cst_9 = arith.constant 3.000000e+00 : f32
    %36 = arith.mulf %35, %cst_9 : f32
    %cst_10 = arith.constant dense<true> : vector<2x128xi1>
    %37 = arith.xori %24, %cst_10 : vector<2x128xi1>
    %38 = arith.ori %29, %37 : vector<2x128xi1>
    %cst_11 = arith.constant 0xFF800000 : f32
    %39 = vector.broadcast %cst_11 : f32 to vector<2x128xf32>
    %40 = arith.select %38, %39, %17 : vector<2x128xi1>, vector<2x128xf32>
    %41 = tpu.iota {dimensions = array<i32: 0>} : vector<8x2x128xi32>
    %42 = vector.shape_cast %3 : vector<2x128xi32> to vector<1x2x128xi32>
    %43 = vector.broadcast %42 : vector<1x2x128xi32> to vector<8x2x128xi32>
    %44 = arith.cmpi eq, %41, %43 : vector<8x2x128xi32>
    %45 = arith.extui %44 : vector<8x2x128xi1> to vector<8x2x128xi32>
    %46 = arith.sitofp %45 : vector<8x2x128xi32> to vector<8x2x128xf32>
    %47 = arith.mulf %13, %46 : vector<8x2x128xf32>
    %cst_12 = arith.constant dense<0.000000e+00> : vector<2x128xf32>
    %48 = vector.multi_reduction <add>, %47, %cst_12 [0] : vector<8x2x128xf32> to vector<2x128xf32>
    %cst_13 = arith.constant 0.000000e+00 : f32
    %49 = vector.broadcast %cst_13 : f32 to vector<2x128xf32>
    %50 = arith.subf %49, %48 : vector<2x128xf32>
    %51 = arith.mulf %50, %31 : vector<2x128xf32>
    %52 = vector.shape_cast %51 : vector<2x128xf32> to vector<1x2x128xf32>
    %cst_14 = arith.constant dense<0.000000e+00> : vector<1xf32>
    %53 = vector.multi_reduction <add>, %52, %cst_14 [1, 2] : vector<1x2x128xf32> to vector<1xf32>
    %54 = vector.shape_cast %53 : vector<1xf32> to vector<1x1x1xf32>
    %55 = vector.extract %54[0, 0, 0] : f32 from vector<1x1x1xf32>
    %56 = arith.mulf %50, %26 : vector<2x128xf32>
    %cst_15 = arith.constant 1.000000e+00 : f32
    %57 = vector.broadcast %cst_15 : f32 to vector<2x128xf32>
    %58 = arith.subf %57, %31 : vector<2x128xf32>
    %59 = arith.mulf %56, %58 : vector<2x128xf32>
    %60 = vector.extract_strided_slice %40 {offsets = [0, 0], sizes = [1, 128], strides = [1, 1]} : vector<2x128xf32> to vector<1x128xf32>
    %c0_16 = arith.constant 0 : index
    %c0_17 = arith.constant 0 : index
    %c0_18 = arith.constant 0 : index
    %61 = vector.load %arg6[%c0_16, %c0_17, %c0_18] : memref<2x1x128xf32, #tpu.memory_space<vmem>>, vector<1x1x128xf32>
    %62 = vector.shape_cast %61 : vector<1x1x128xf32> to vector<1x128xf32>
    %63 = vector.shape_cast %60 : vector<1x128xf32> to vector<1x1x128xf32>
    tpu.vector_store %arg6[%c0_16, %c0_17, %c0_18], %63 {strides = array<i32>} : memref<2x1x128xf32, #tpu.memory_space<vmem>>, vector<1x1x128xf32>,
    %64 = vector.extract_strided_slice %59 {offsets = [0, 0], sizes = [1, 128], strides = [1, 1]} : vector<2x128xf32> to vector<1x128xf32>
    %c0_19 = arith.constant 0 : index
    %c0_20 = arith.constant 0 : index
    %c0_21 = arith.constant 0 : index
    %65 = vector.load %arg7[%c0_19, %c0_20, %c0_21] : memref<2x1x128xf32, #tpu.memory_space<vmem>>, vector<1x1x128xf32>
    %66 = vector.shape_cast %65 : vector<1x1x128xf32> to vector<1x128xf32>
    %67 = vector.shape_cast %64 : vector<1x128xf32> to vector<1x1x128xf32>
    tpu.vector_store %arg7[%c0_19, %c0_20, %c0_21], %67 {strides = array<i32>} : memref<2x1x128xf32, #tpu.memory_space<vmem>>, vector<1x1x128xf32>,
    %68 = vector.extract_strided_slice %40 {offsets = [1, 0], sizes = [1, 128], strides = [1, 1]} : vector<2x128xf32> to vector<1x128xf32>
    %c1 = arith.constant 1 : index
    %c0_22 = arith.constant 0 : index
    %c0_23 = arith.constant 0 : index
    %69 = vector.load %arg6[%c1, %c0_22, %c0_23] : memref<2x1x128xf32, #tpu.memory_space<vmem>>, vector<1x1x128xf32>
    %70 = vector.shape_cast %69 : vector<1x1x128xf32> to vector<1x128xf32>
    %71 = vector.shape_cast %68 : vector<1x128xf32> to vector<1x1x128xf32>
    tpu.vector_store %arg6[%c1, %c0_22, %c0_23], %71 {strides = array<i32>} : memref<2x1x128xf32, #tpu.memory_space<vmem>>, vector<1x1x128xf32>,
    %72 = vector.extract_strided_slice %59 {offsets = [1, 0], sizes = [1, 128], strides = [1, 1]} : vector<2x128xf32> to vector<1x128xf32>
    %c1_24 = arith.constant 1 : index
    %c0_25 = arith.constant 0 : index
    %c0_26 = arith.constant 0 : index
    %73 = vector.load %arg7[%c1_24, %c0_25, %c0_26] : memref<2x1x128xf32, #tpu.memory_space<vmem>>, vector<1x1x128xf32>
    %74 = vector.shape_cast %73 : vector<1x1x128xf32> to vector<1x128xf32>
    %75 = vector.shape_cast %72 : vector<1x128xf32> to vector<1x1x128xf32>
    tpu.vector_store %arg7[%c1_24, %c0_25, %c0_26], %75 {strides = array<i32>} : memref<2x1x128xf32, #tpu.memory_space<vmem>>, vector<1x1x128xf32>,
    %76 = tpu.iota {dimensions = array<i32: 1>} : vector<1x128xi32>
    %77 = tpu.iota {dimensions = array<i32: 0>} : vector<128x128xi32>
    %cst_27 = arith.constant 0.000000e+00 : f32
    %78 = vector.broadcast %cst_27 : f32 to vector<1x128xf32>
    %c0_i32_28 = arith.constant 0 : i32
    %79 = arith.index_cast %c0_i32_28 : i32 to index
    %c0_29 = arith.constant 0 : index
    %c0_30 = arith.constant 0 : index
    %80 = vector.load %arg6[%79, %c0_29, %c0_30] : memref<2x1x128xf32, #tpu.memory_space<vmem>>, vector<1x1x128xf32>
    %81 = vector.shape_cast %80 : vector<1x1x128xf32> to vector<1x128xf32>
    %82 = vector.shape_cast %81 : vector<1x128xf32> to vector<1x128xf32>
    %83 = vector.broadcast %82 : vector<1x128xf32> to vector<128x128xf32>
    %84 = tpu.transpose %83, [1, 0] : vector<128x128xf32> -> vector<128x128xf32>
    %c128_i32_31 = arith.constant 128 : i32
    %85 = arith.muli %c0_i32_28, %c128_i32_31 : i32
    %86 = vector.broadcast %85 : i32 to vector<128x128xi32>
    %87 = arith.addi %86, %77 : vector<128x128xi32>
    %cst_32 = arith.constant 0.000000e+00 : f32
    %88 = vector.broadcast %cst_32 : f32 to vector<128x128xf32>
    %c0_i32_33 = arith.constant 0 : i32
    %89 = arith.index_cast %c0_i32_33 : i32 to index
    %c0_34 = arith.constant 0 : index
    %c0_35 = arith.constant 0 : index
    %90 = vector.load %arg6[%89, %c0_34, %c0_35] : memref<2x1x128xf32, #tpu.memory_space<vmem>>, vector<1x1x128xf32>
    %91 = vector.shape_cast %90 : vector<1x1x128xf32> to vector<1x128xf32>
    %c128_i32_36 = arith.constant 128 : i32
    %92 = arith.muli %c0_i32_33, %c128_i32_36 : i32
    %93 = vector.broadcast %92 : i32 to vector<1x128xi32>
    %94 = arith.addi %93, %76 : vector<1x128xi32>
    %95 = vector.broadcast %91 : vector<1x128xf32> to vector<128x128xf32>
    %96 = arith.cmpf ogt, %95, %84 : vector<128x128xf32>
    %97 = vector.broadcast %91 : vector<1x128xf32> to vector<128x128xf32>
    %98 = arith.cmpf oeq, %97, %84 : vector<128x128xf32>
    %99 = vector.broadcast %94 : vector<1x128xi32> to vector<128x128xi32>
    %100 = arith.cmpi slt, %99, %87 : vector<128x128xi32>
    %101 = arith.andi %98, %100 : vector<128x128xi1>
    %102 = arith.ori %96, %101 : vector<128x128xi1>
    %103 = arith.extui %102 : vector<128x128xi1> to vector<128x128xi32>
    %104 = arith.sitofp %103 : vector<128x128xi32> to vector<128x128xf32>
    %105 = arith.addf %88, %104 : vector<128x128xf32>
    %c1_i32 = arith.constant 1 : i32
    %106 = arith.index_cast %c1_i32 : i32 to index
    %c0_37 = arith.constant 0 : index
    %c0_38 = arith.constant 0 : index
    %107 = vector.load %arg6[%106, %c0_37, %c0_38] : memref<2x1x128xf32, #tpu.memory_space<vmem>>, vector<1x1x128xf32>
    %108 = vector.shape_cast %107 : vector<1x1x128xf32> to vector<1x128xf32>
    %c128_i32_39 = arith.constant 128 : i32
    %109 = arith.muli %c1_i32, %c128_i32_39 : i32
    %110 = vector.broadcast %109 : i32 to vector<1x128xi32>
    %111 = arith.addi %110, %76 : vector<1x128xi32>
    %112 = vector.broadcast %108 : vector<1x128xf32> to vector<128x128xf32>
    %113 = arith.cmpf ogt, %112, %84 : vector<128x128xf32>
    %114 = vector.broadcast %108 : vector<1x128xf32> to vector<128x128xf32>
    %115 = arith.cmpf oeq, %114, %84 : vector<128x128xf32>
    %116 = vector.broadcast %111 : vector<1x128xi32> to vector<128x128xi32>
    %117 = arith.cmpi slt, %116, %87 : vector<128x128xi32>
    %118 = arith.andi %115, %117 : vector<128x128xi1>
    %119 = arith.ori %113, %118 : vector<128x128xi1>
    %120 = arith.extui %119 : vector<128x128xi1> to vector<128x128xi32>
    %121 = arith.sitofp %120 : vector<128x128xi32> to vector<128x128xf32>
    %122 = arith.addf %105, %121 : vector<128x128xf32>
    %c2_i32 = arith.constant 2 : i32
    %123 = tpu.transpose %122, [1, 0] : vector<128x128xf32> -> vector<128x128xf32>
    %cst_40 = arith.constant dense<0.000000e+00> : vector<128xf32>
    %124 = vector.multi_reduction <add>, %123, %cst_40 [0] : vector<128x128xf32> to vector<128xf32>
    %125 = vector.shape_cast %124 : vector<128xf32> to vector<1x128xf32>
    %126 = vector.broadcast %36 : f32 to vector<1x128xf32>
    %127 = arith.cmpf olt, %125, %126 : vector<1x128xf32>
    %128 = arith.extui %127 : vector<1x128xi1> to vector<1x128xi32>
    %129 = arith.sitofp %128 : vector<1x128xi32> to vector<1x128xf32>
    %130 = arith.index_cast %c0_i32_28 : i32 to index
    %c0_41 = arith.constant 0 : index
    %c0_42 = arith.constant 0 : index
    %131 = vector.load %arg7[%130, %c0_41, %c0_42] : memref<2x1x128xf32, #tpu.memory_space<vmem>>, vector<1x1x128xf32>
    %132 = vector.shape_cast %131 : vector<1x1x128xf32> to vector<1x128xf32>
    %133 = arith.mulf %132, %129 : vector<1x128xf32>
    %134 = arith.addf %78, %133 : vector<1x128xf32>
    %c1_i32_43 = arith.constant 1 : i32
    %135 = arith.index_cast %c1_i32_43 : i32 to index
    %c0_44 = arith.constant 0 : index
    %c0_45 = arith.constant 0 : index
    %136 = vector.load %arg6[%135, %c0_44, %c0_45] : memref<2x1x128xf32, #tpu.memory_space<vmem>>, vector<1x1x128xf32>
    %137 = vector.shape_cast %136 : vector<1x1x128xf32> to vector<1x128xf32>
    %138 = vector.shape_cast %137 : vector<1x128xf32> to vector<1x128xf32>
    %139 = vector.broadcast %138 : vector<1x128xf32> to vector<128x128xf32>
    %140 = tpu.transpose %139, [1, 0] : vector<128x128xf32> -> vector<128x128xf32>
    %c128_i32_46 = arith.constant 128 : i32
    %141 = arith.muli %c1_i32_43, %c128_i32_46 : i32
    %142 = vector.broadcast %141 : i32 to vector<128x128xi32>
    %143 = arith.addi %142, %77 : vector<128x128xi32>
    %cst_47 = arith.constant 0.000000e+00 : f32
    %144 = vector.broadcast %cst_47 : f32 to vector<128x128xf32>
    %c0_i32_48 = arith.constant 0 : i32
    %145 = arith.index_cast %c0_i32_48 : i32 to index
    %c0_49 = arith.constant 0 : index
    %c0_50 = arith.constant 0 : index
    %146 = vector.load %arg6[%145, %c0_49, %c0_50] : memref<2x1x128xf32, #tpu.memory_space<vmem>>, vector<1x1x128xf32>
    %147 = vector.shape_cast %146 : vector<1x1x128xf32> to vector<1x128xf32>
    %c128_i32_51 = arith.constant 128 : i32
    %148 = arith.muli %c0_i32_48, %c128_i32_51 : i32
    %149 = vector.broadcast %148 : i32 to vector<1x128xi32>
    %150 = arith.addi %149, %76 : vector<1x128xi32>
    %151 = vector.broadcast %147 : vector<1x128xf32> to vector<128x128xf32>
    %152 = arith.cmpf ogt, %151, %140 : vector<128x128xf32>
    %153 = vector.broadcast %147 : vector<1x128xf32> to vector<128x128xf32>
    %154 = arith.cmpf oeq, %153, %140 : vector<128x128xf32>
    %155 = vector.broadcast %150 : vector<1x128xi32> to vector<128x128xi32>
    %156 = arith.cmpi slt, %155, %143 : vector<128x128xi32>
    %157 = arith.andi %154, %156 : vector<128x128xi1>
    %158 = arith.ori %152, %157 : vector<128x128xi1>
    %159 = arith.extui %158 : vector<128x128xi1> to vector<128x128xi32>
    %160 = arith.sitofp %159 : vector<128x128xi32> to vector<128x128xf32>
    %161 = arith.addf %144, %160 : vector<128x128xf32>
    %c1_i32_52 = arith.constant 1 : i32
    %162 = arith.index_cast %c1_i32_52 : i32 to index
    %c0_53 = arith.constant 0 : index
    %c0_54 = arith.constant 0 : index
    %163 = vector.load %arg6[%162, %c0_53, %c0_54] : memref<2x1x128xf32, #tpu.memory_space<vmem>>, vector<1x1x128xf32>
    %164 = vector.shape_cast %163 : vector<1x1x128xf32> to vector<1x128xf32>
    %c128_i32_55 = arith.constant 128 : i32
    %165 = arith.muli %c1_i32_52, %c128_i32_55 : i32
    %166 = vector.broadcast %165 : i32 to vector<1x128xi32>
    %167 = arith.addi %166, %76 : vector<1x128xi32>
    %168 = vector.broadcast %164 : vector<1x128xf32> to vector<128x128xf32>
    %169 = arith.cmpf ogt, %168, %140 : vector<128x128xf32>
    %170 = vector.broadcast %164 : vector<1x128xf32> to vector<128x128xf32>
    %171 = arith.cmpf oeq, %170, %140 : vector<128x128xf32>
    %172 = vector.broadcast %167 : vector<1x128xi32> to vector<128x128xi32>
    %173 = arith.cmpi slt, %172, %143 : vector<128x128xi32>
    %174 = arith.andi %171, %173 : vector<128x128xi1>
    %175 = arith.ori %169, %174 : vector<128x128xi1>
    %176 = arith.extui %175 : vector<128x128xi1> to vector<128x128xi32>
    %177 = arith.sitofp %176 : vector<128x128xi32> to vector<128x128xf32>
    %178 = arith.addf %161, %177 : vector<128x128xf32>
    %c2_i32_56 = arith.constant 2 : i32
    %179 = tpu.transpose %178, [1, 0] : vector<128x128xf32> -> vector<128x128xf32>
    %cst_57 = arith.constant dense<0.000000e+00> : vector<128xf32>
    %180 = vector.multi_reduction <add>, %179, %cst_57 [0] : vector<128x128xf32> to vector<128xf32>
    %181 = vector.shape_cast %180 : vector<128xf32> to vector<1x128xf32>
    %182 = vector.broadcast %36 : f32 to vector<1x128xf32>
    %183 = arith.cmpf olt, %181, %182 : vector<1x128xf32>
    %184 = arith.extui %183 : vector<1x128xi1> to vector<1x128xi32>
    %185 = arith.sitofp %184 : vector<1x128xi32> to vector<1x128xf32>
    %186 = arith.index_cast %c1_i32_43 : i32 to index
    %c0_58 = arith.constant 0 : index
    %c0_59 = arith.constant 0 : index
    %187 = vector.load %arg7[%186, %c0_58, %c0_59] : memref<2x1x128xf32, #tpu.memory_space<vmem>>, vector<1x1x128xf32>
    %188 = vector.shape_cast %187 : vector<1x1x128xf32> to vector<1x128xf32>
    %189 = arith.mulf %188, %185 : vector<1x128xf32>
    %190 = arith.addf %134, %189 : vector<1x128xf32>
    %c2_i32_60 = arith.constant 2 : i32
    %191 = vector.shape_cast %190 : vector<1x128xf32> to vector<1x1x128xf32>
    %cst_61 = arith.constant dense<0.000000e+00> : vector<1xf32>
    %192 = vector.multi_reduction <add>, %191, %cst_61 [1, 2] : vector<1x1x128xf32> to vector<1xf32>
    %193 = vector.shape_cast %192 : vector<1xf32> to vector<1x1x1xf32>
    %194 = vector.extract %193[0, 0, 0] : f32 from vector<1x1x1xf32>
    %195 = arith.addf %55, %194 : f32
    %c0_62 = arith.constant 0 : index
    %c0_63 = arith.constant 0 : index
    %c0_64 = arith.constant 0 : index
    %c0_65 = arith.constant 0 : index
    %196 = vector.load %arg2[%c0_62, %c0_63, %c0_64, %c0_65] : memref<1x4x2x128xf32, #tpu.memory_space<vmem>>, vector<1x4x2x128xf32>
    %197 = vector.shape_cast %196 : vector<1x4x2x128xf32> to vector<4x2x128xf32>
    %c0_66 = arith.constant 0 : index
    %c0_67 = arith.constant 0 : index
    %c0_68 = arith.constant 0 : index
    %c0_69 = arith.constant 0 : index
    %198 = vector.load %arg4[%c0_66, %c0_67, %c0_68, %c0_69] : memref<1x4x2x128xf32, #tpu.memory_space<vmem>>, vector<1x4x2x128xf32>
    %199 = vector.shape_cast %198 : vector<1x4x2x128xf32> to vector<4x2x128xf32>
    %200 = arith.subf %197, %199 : vector<4x2x128xf32>
    %201 = math.absf %200 : vector<4x2x128xf32>
    %cst_70 = arith.constant 1.000000e+00 : f32
    %202 = vector.broadcast %cst_70 : f32 to vector<4x2x128xf32>
    %203 = arith.cmpf olt, %201, %202 : vector<4x2x128xf32>
    %cst_71 = arith.constant 5.000000e-01 : f32
    %204 = vector.broadcast %cst_71 : f32 to vector<4x2x128xf32>
    %205 = arith.mulf %204, %201 : vector<4x2x128xf32>
    %206 = arith.mulf %205, %201 : vector<4x2x128xf32>
    %cst_72 = arith.constant 5.000000e-01 : f32
    %207 = vector.broadcast %cst_72 : f32 to vector<4x2x128xf32>
    %208 = arith.subf %201, %207 : vector<4x2x128xf32>
    %209 = arith.select %203, %206, %208 : vector<4x2x128xi1>, vector<4x2x128xf32>
    %210 = vector.shape_cast %31 : vector<2x128xf32> to vector<1x2x128xf32>
    %211 = vector.broadcast %210 : vector<1x2x128xf32> to vector<4x2x128xf32>
    %212 = arith.mulf %209, %211 : vector<4x2x128xf32>
    %213 = vector.shape_cast %212 : vector<4x2x128xf32> to vector<1x4x2x128xf32>
    %cst_73 = arith.constant dense<0.000000e+00> : vector<1xf32>
    %214 = vector.multi_reduction <add>, %213, %cst_73 [1, 2, 3] : vector<1x4x2x128xf32> to vector<1xf32>
    %215 = vector.shape_cast %214 : vector<1xf32> to vector<1x1x1x1xf32>
    %216 = vector.extract %215[0, 0, 0, 0] : f32 from vector<1x1x1x1xf32>
    %217 = tpu.iota {dimensions = array<i32: 1>} : vector<1x8x128xi32>
    %c0_i32_74 = arith.constant 0 : i32
    %218 = vector.broadcast %c0_i32_74 : i32 to vector<1x8x128xi32>
    %219 = arith.cmpi eq, %217, %218 : vector<1x8x128xi32>
    %c1_i32_75 = arith.constant 1 : i32
    %220 = vector.broadcast %c1_i32_75 : i32 to vector<1x8x128xi32>
    %221 = arith.cmpi eq, %217, %220 : vector<1x8x128xi32>
    %c2_i32_76 = arith.constant 2 : i32
    %222 = vector.broadcast %c2_i32_76 : i32 to vector<1x8x128xi32>
    %223 = arith.cmpi eq, %217, %222 : vector<1x8x128xi32>
    %cst_77 = arith.constant 0.000000e+00 : f32
    %224 = vector.broadcast %35 : f32 to vector<1x8x128xf32>
    %225 = vector.broadcast %cst_77 : f32 to vector<1x8x128xf32>
    %226 = arith.select %223, %224, %225 : vector<1x8x128xi1>, vector<1x8x128xf32>
    %227 = vector.broadcast %195 : f32 to vector<1x8x128xf32>
    %228 = arith.select %221, %227, %226 : vector<1x8x128xi1>, vector<1x8x128xf32>
    %229 = vector.broadcast %216 : f32 to vector<1x8x128xf32>
    %230 = arith.select %219, %229, %228 : vector<1x8x128xi1>, vector<1x8x128xf32>
    %c0_78 = arith.constant 0 : index
    %c0_79 = arith.constant 0 : index
    %c0_80 = arith.constant 0 : index
    %231 = vector.load %arg5[%c0_78, %c0_79, %c0_80] : memref<1x8x128xf32, #tpu.memory_space<vmem>>, vector<1x8x128xf32>
    tpu.vector_store %arg5[%c0_78, %c0_79, %c0_80], %230 {strides = array<i32>} : memref<1x8x128xf32, #tpu.memory_space<vmem>>, vector<1x8x128xf32>,
    return
  }
  func.func @transform_0(%arg0: i32) -> (i32, i32, i32, i32) {
    %c0_i32 = arith.constant 0 : i32
    %c0_i32_0 = arith.constant 0 : i32
    %c0_i32_1 = arith.constant 0 : i32
    %c0_i32_2 = arith.constant 0 : i32
    return %arg0, %c0_i32, %c0_i32_0, %c0_i32_1 : i32, i32, i32, i32
  }
  func.func @transform_1(%arg0: i32) -> (i32, i32, i32, i32) {
    %c0_i32 = arith.constant 0 : i32
    %c0_i32_0 = arith.constant 0 : i32
    %c0_i32_1 = arith.constant 0 : i32
    %c0_i32_2 = arith.constant 0 : i32
    return %arg0, %c0_i32, %c0_i32_0, %c0_i32_1 : i32, i32, i32, i32
  }
  func.func @transform_2(%arg0: i32) -> (i32, i32, i32) {
    %c0_i32 = arith.constant 0 : i32
    %c0_i32_0 = arith.constant 0 : i32
    %c0_i32_1 = arith.constant 0 : i32
    return %arg0, %c0_i32, %c0_i32_0 : i32, i32, i32
  }
  func.func @transform_3(%arg0: i32) -> (i32, i32, i32, i32) {
    %c0_i32 = arith.constant 0 : i32
    %c0_i32_0 = arith.constant 0 : i32
    %c0_i32_1 = arith.constant 0 : i32
    %c0_i32_2 = arith.constant 0 : i32
    return %arg0, %c0_i32, %c0_i32_0, %c0_i32_1 : i32, i32, i32, i32
  }
  func.func @transform_4(%arg0: i32) -> (i32, i32, i32) {
    %c0_i32 = arith.constant 0 : i32
    %c0_i32_0 = arith.constant 0 : i32
    %c0_i32_1 = arith.constant 0 : i32
    return %arg0, %c0_i32, %c0_i32_0 : i32, i32, i32
  }
}

</mosaic_0001>

<bundles_post_ra>
// kernel: tpu_custom_call.1
= control target key start
LH: loop header
LB: loop body
LE: loop exit
PB: predicated region body
PF: predicated region fallthrough
CT: control target
= control target key end

     0   :  { %s3041_s0 = inlined_call_operand.hbm [shape: f32[2,8,2,128], index: 0, kind: input, shape index: {}]   ;;  %s3042_s1 = inlined_call_operand.hbm [shape: f32[2,4,2,128], index: 1, kind: input, shape index: {}]   ;;  %s3043_s2 = inlined_call_operand.hbm [shape: s32[2,2,128], index: 2, kind: input, shape index: {}]   ;;  %s3044_s3 = inlined_call_operand.hbm [shape: f32[2,4,2,128], index: 3, kind: input, shape index: {}]   ;;  %s3045_s4 = inlined_call_operand.hbm [shape: f32[2,8,128], index: 4, kind: output, shape index: {}]  }
   0x1   :  { %3060 = sst [smem:[#allocation21_spill]] %s3041_s0 }
   0x2   :  { %3061 = sst [smem:[#allocation22_spill]] %s3042_s1 }
   0x3   :  { %9 = vsyncpa [#allocation5], 0 }
   0x4   :  { %11 = vsyncpa [#allocation5 + $0x1], 0 }
   0x5   :  { %12 = vsyncpa [#allocation8], 0 }
   0x6   :  { %14 = vsyncpa [#allocation8 + $0x1], 0 }
   0x7   :  { %15 = vsyncpa [#allocation11], 0 }
   0x8   :  { %17 = vsyncpa [#allocation11 + $0x1], 0 }
   0x9   :  { %18 = vsyncpa [#allocation6], 0 }
   0xa   :  { %20 = vsyncpa [#allocation6 + $0x1], 0  ;;  %s1889_s15 = smov 0   ;;  %s1891_s16 = smov 0  }
   0xb   :  { %s1893_s17 = smov 0   ;;  %s1895_s18 = smov 0  }
   0xc LB: > { %3062 = sst [smem:[#allocation17_spill]] %s1849_s17  ;;  %s1910_s19 = sadd.s32 4294967295, %s1853_s18   ;;  %s1853_s18 = sphi %s1895_s18, %s3147_s18   ;;  %s1849_s17 = sphi %s1893_s17, %s3149_s17   ;;  %s1845_s16 = sphi %s1891_s16, %s3151_s16   ;;  %s1841_s15 = sphi %s1889_s15, %s3150_s15  }
   0xd   : > { %s1469_s20 = sadd.s32 4294967294, %s1853_s18   ;;  %s1914_s21 = sadd.s32 1, %s1853_s18  }
   0xe   : > { %3063 = sst [smem:[#allocation18_spill]] %s1914_s21  ;;  %s33_s22 = sadd.s32 1, %s1849_s17 }
   0xf   : > { %s30_s23 = ssub.s32 %s1853_s18, %s1914_s21  ;;  %p40_p0 = scmp.ne.s32.totalorder %s1849_s17, %s1845_s16 }
  0x10   : > { %p31_p1 = scmp.eq.s32.totalorder %s30_s23, 0  ;;  %p41_p2 = scmp.eq.s32.totalorder %s1853_s18, 0 }
  0x11   : > { %p46_p3 = scmp.ne.s32.totalorder %s1845_s16, %s1841_s15  ;;  %p47_p4 = scmp.eq.s32.totalorder %s1910_s19, 0 }
  0x12   : > { %s1926_s24 = scalar_select %p31_p1, %s1849_s17, %s33_s22  }
  0x13   : > { %p42_p5 = por %p41_p2, %p40_p0  ;;  %p1928_p6 = por %p47_p4, %p46_p3 }
  0x14   : > { %3064 = sst [smem:[#allocation19_spill]] %s1926_s24  ;;  %p148_p7 = scmp.eq.s32.totalorder %s1910_s19, 1 }
  0x15   : > { %s3065_s25 = scalar_select %p1928_p6, 1, 0 }
  0x16   : > { %p154_p8 = scmp.eq.s32.totalorder %s1469_s20, 1  ;;  %p1613_p10 = scmp.lt.s32.totalorder %s1853_s18, 2 }
  0x17   : > { %p1935_p11 = por %p148_p7, %p40_p0  ;;  %s1944_s28 = sand.u32 1, %s1849_s17  }
  0x18   : > { %p1939_p12 = por %p154_p8, %p46_p3  ;;  %p1946_p13 = pnand %p1613_p10, %p42_p5 }
  0x19   : > { %s3066_s26 = scalar_select %p1935_p11, 1, 0 }
  0x1a   : > { %s3067_s27 = scalar_select %p1939_p12, 1, 0 }
  0x1b   : > { %s195_s30 = sand.u32 1, %s1853_s18   ;;  %s3048_s5 = sshll.u32 %s1944_s28, 3 }
  0x1c   : > { %3068 = sst [smem:[#allocation20_spill]] %s3067_s27  ;;  %s3049_s6 = sshll.u32 %s1853_s18, 7 }
  0x1d   : > { %s3070_s1 = sld [smem:[#allocation22_spill]]  ;;  %s199_s10 = scalar_lea.vmem [#allocation7], %s3048_s5 }
  0x1e   : > { %s206_s11 = sshll.u32 %s199_s10, 4  ;;  %s1965_s12 = scalar_lea.sflag [#allocation8], %s195_s30  ;;  %s1962_s11 = int_to_ptr.vmem [resolvable:$true] %s206_s11 }
  0x1f   : > { %p1971_p2 = pneg %p1946_p13 }
  0x23   : > { %s1958_s9 = scalar_lea.hbm %s3070_s1, %s3049_s6  ;;  %s1674_s23 = scalar_lea.hbm %s3070_s1, 256 }
  0x24   : > { %s1669_s13 = scalar_lea.hbm %s1958_s9, 128  ;;  %p1675_p5 = scmp.lt.s32.totalorder %s1958_s9, %s3070_s1 }
  0x25   : > { %p1670_p1 = scmp.ne.s32.totalorder %s1958_s9, %s1669_s13  ;;  %p1676_p7 = scmp.lt.s32.totalorder %s1674_s23, %s1669_s13 }
  0x27   : > { %p1672_p3 = pnand %p1971_p2, %p1670_p1  ;;  %p1677_p8 = por %p1676_p7, %p1675_p5 }
  0x29   : > { %p1673_p4 = pneg %p1672_p3 }
  0x2b   : > { %p1678_p10 = pnand %p1677_p8, %p1673_p4 }
  0x2d   : > { %1681 = shalt.err (!%p1678_p10)
}
  0x2e   : > { %s1682_s30 = scalar_lea.vmem %s1962_s11, 128  ;;  %s1855_s10 = smov [#allocation7]  }
  0x2f   : > { %p1683_p9 = scmp.ne.s32.totalorder %s1962_s11, %s1682_s30  ;;  %s1687_s20 = sshll.u32 %s1855_s10, 4  ;;  %s1688_s20 = int_to_ptr.vmem [resolvable:$false] %s1687_s20 }
  0x30   : > { %s1689_s22 = scalar_lea.vmem %s1688_s20, 256  ;;  %p1690_p0 = scmp.lt.s32.totalorder %s1962_s11, %s1688_s20 }
  0x31   : > { %p1685_p1 = pnand %p1683_p9, %p1971_p2  ;;  %p1691_p12 = scmp.lt.s32.totalorder %s1689_s22, %s1682_s30 }
  0x33   : > { %p1686_p3 = pneg %p1685_p1  ;;  %p1692_p11 = por %p1691_p12, %p1690_p0 }
  0x35   : > { %p1693_p6 = pnand %p1692_p11, %p1686_p3 }
  0x37   : > { %1696 = shalt.err (!%p1693_p6)
}
  0x38   : > { %s3050_s13 = smov 32   ;;  %s3052_s23 = smov 2  }
  0x39   : > { %1602 = dma.hbm_to_vmem [thread:$0]  (!%p1946_p13), %s1958_s9, 128, %s1962_s11, %s1965_s12, %s3050_s13, %s3050_s13, %s3052_s23  }
  0x3a   : > { %p253_p9 = scmp.lt.s32.totalorder %s1853_s18, 3  ;;  %s1472_s7 = sshll.u32 %s1944_s28, 4 }
  0x3b   : > { %s1575_s8 = sshll.u32 %s1853_s18, 8  ;;  %p3072_p6 = scmp.ge.s32.totalorder %s1853_s18, 1 }
  0x3c   : > { %s3074_s0 = sld [smem:[#allocation21_spill]]  ;;  %s178_s5 = scalar_lea.vmem [#allocation4], %s1472_s7 }
  0x3d   : > { %p2002_p11 = pnand %p3072_p6, %p253_p9  ;;  %s185_s6 = sshll.u32 %s178_s5, 4  ;;  %s2011_s6 = int_to_ptr.vmem [resolvable:$true] %s185_s6 }
  0x3e   : > { %s1478_s9 = sshll.u32 %s1944_s28, 1  ;;  %s175_s11 = scalar_lea.sflag [#allocation5], %s1944_s28 }
  0x3f   : > { %s3073_s30 = scalar_select %p2002_p11, 1, 0 }
  0x42   : > { %s2009_s22 = scalar_lea.hbm %s3074_s0, %s1575_s8  ;;  %s1702_s10 = scalar_lea.hbm %s3074_s0, 512 }
  0x43   : > { %s1697_s13 = scalar_lea.hbm %s2009_s22, 256  ;;  %p1703_p5 = scmp.lt.s32.totalorder %s2009_s22, %s3074_s0 }
  0x44   : > { %p1698_p12 = scmp.ne.s32.totalorder %s2009_s22, %s1697_s13  ;;  %p1704_p7 = scmp.lt.s32.totalorder %s1702_s10, %s1697_s13 }
  0x46   : > { %p1700_p0 = pnand %p1698_p12, %p1971_p2  ;;  %p1705_p8 = por %p1704_p7, %p1703_p5 }
  0x48   : > { %p1701_p4 = pneg %p1700_p0 }
  0x4a   : > { %p1706_p10 = pnand %p1705_p8, %p1701_p4 }
  0x4c   : > { %1709 = shalt.err (!%p1706_p10)
}
  0x4d   : > { %s1710_s5 = scalar_lea.vmem %s2011_s6, 256  ;;  %s1858_s7 = smov [#allocation4]  }
  0x4e   : > { %p1711_p1 = scmp.ne.s32.totalorder %s2011_s6, %s1710_s5  ;;  %s1715_s1 = sshll.u32 %s1858_s7, 4  ;;  %s1716_s1 = int_to_ptr.vmem [resolvable:$false] %s1715_s1 }
  0x4f   : > { %s1717_s23 = scalar_lea.vmem %s1716_s1, 512  ;;  %p1718_p6 = scmp.lt.s32.totalorder %s2011_s6, %s1716_s1 }
  0x50   : > { %p1713_p3 = pnand %p1711_p1, %p1971_p2  ;;  %p1719_p12 = scmp.lt.s32.totalorder %s1717_s23, %s1710_s5 }
  0x52   : > { %p1714_p9 = pneg %p1713_p3  ;;  %p1720_p0 = por %p1719_p12, %p1718_p6 }
  0x54   : > { %p1721_p11 = pnand %p1720_p0, %p1714_p9 }
  0x56   : > { %1724 = shalt.err (!%p1721_p11)
}
  0x57   : > { %s3075_s13 = smov 2   ;;  %s3076_s10 = smov 32  }
  0x58   : > { %1599 = dma.hbm_to_vmem [thread:$0]  (!%p1946_p13), %s2009_s22, 256, %s2011_s6, %s175_s11, %s3076_s10, %s3076_s10, %s3075_s13  }
  0x59   : > { %s1479_s8 = sshll.u32 %s1853_s18, 5  ;;  %s220_s5 = scalar_lea.vmem [#allocation9], %s1478_s9 }
  0x5a   : > { %s225_s1 = scalar_lea.hbm %s3043_s2, %s1479_s8  ;;  %s227_s23 = sshll.u32 %s220_s5, 4  ;;  %s228_s23 = int_to_ptr.vmem [resolvable:$true] %s227_s23 }
  0x5b   : > { %s1725_s0 = scalar_lea.hbm %s225_s1, 32  ;;  %s1730_s21 = scalar_lea.hbm %s3043_s2, 64 }
  0x5c   : > { %p1726_p11 = scmp.ne.s32.totalorder %s225_s1, %s1725_s0  ;;  %p1731_p7 = scmp.lt.s32.totalorder %s225_s1, %s3043_s2 }
  0x5d   : > { %p1732_p8 = scmp.lt.s32.totalorder %s1730_s21, %s1725_s0 }
  0x5e   : > { %p1728_p4 = pnand %p1726_p11, %p1971_p2 }
  0x5f   : > { %p1733_p10 = por %p1732_p8, %p1731_p7 }
  0x60   : > { %p1729_p5 = pneg %p1728_p4 }
  0x62   : > { %p1734_p1 = pnand %p1733_p10, %p1729_p5 }
  0x64   : > { %1737 = shalt.err (!%p1734_p1)
}
  0x65   : > { %s1738_s22 = scalar_lea.vmem %s228_s23, 32  ;;  %s1859_s9 = smov [#allocation9]  }
  0x66   : > { %p1739_p3 = scmp.ne.s32.totalorder %s228_s23, %s1738_s22  ;;  %s1743_s11 = sshll.u32 %s1859_s9, 4  ;;  %s1744_s11 = int_to_ptr.vmem [resolvable:$false] %s1743_s11 }
  0x67   : > { %s1745_s8 = scalar_lea.vmem %s1744_s11, 64  ;;  %p1746_p12 = scmp.lt.s32.totalorder %s228_s23, %s1744_s11 }
  0x68   : > { %p1741_p9 = pnand %p1739_p3, %p1971_p2  ;;  %p1747_p0 = scmp.lt.s32.totalorder %s1745_s8, %s1738_s22 }
  0x6a   : > { %p1742_p6 = pneg %p1741_p9  ;;  %p1748_p11 = por %p1747_p0, %p1746_p12 }
  0x6c   : > { %p1749_p4 = pnand %p1748_p11, %p1742_p6 }
  0x6e   : > { %1752 = shalt.err (!%p1749_p4)
}
  0x6f   : > { %1605 = dma.hbm_to_vmem [thread:$0]  (!%p1946_p13), %s225_s1, 32, %s228_s23, %s1965_s12  }
  0x70   : > { %s3077_s0 = sshll.u32 %s1853_s18, 7  ;;  %s3078_s27 = sshll.u32 %s1944_s28, 3 }
  0x71   : > { %s2062_s24 = scalar_lea.hbm %s3044_s3, %s3077_s0  ;;  %s238_s20 = scalar_lea.vmem [#allocation10], %s3078_s27 }
  0x72   : > { %s245_s7 = sshll.u32 %s238_s20, 4  ;;  %s235_s5 = scalar_lea.sflag [#allocation11], %s1944_s28  ;;  %s2066_s7 = int_to_ptr.vmem [resolvable:$true] %s245_s7 }
  0x73   : > { %s1753_s6 = scalar_lea.hbm %s2062_s24, 128  ;;  %s1758_s23 = scalar_lea.hbm %s3044_s3, 256 }
  0x74   : > { %p1754_p5 = scmp.ne.s32.totalorder %s2062_s24, %s1753_s6  ;;  %p1759_p10 = scmp.lt.s32.totalorder %s2062_s24, %s3044_s3 }
  0x75   : > { %p1760_p1 = scmp.lt.s32.totalorder %s1758_s23, %s1753_s6 }
  0x76   : > { %p1756_p7 = pnand %p1754_p5, %p1971_p2 }
  0x77   : > { %p1761_p3 = por %p1760_p1, %p1759_p10 }
  0x78   : > { %p1757_p8 = pneg %p1756_p7 }
  0x7a   : > { %p1762_p9 = pnand %p1761_p3, %p1757_p8 }
  0x7c   : > { %1765 = shalt.err (!%p1762_p9)
}
  0x7d   : > { %s1766_s28 = scalar_lea.vmem %s2066_s7, 128  ;;  %s1860_s11 = smov [#allocation10]  }
  0x7e   : > { %p1767_p6 = scmp.ne.s32.totalorder %s2066_s7, %s1766_s28  ;;  %s1771_s8 = sshll.u32 %s1860_s11, 4  ;;  %s1772_s8 = int_to_ptr.vmem [resolvable:$false] %s1771_s8 }
  0x7f   : > { %s1773_s0 = scalar_lea.vmem %s1772_s8, 256  ;;  %p1774_p11 = scmp.lt.s32.totalorder %s2066_s7, %s1772_s8 }
  0x80   : > { %p1769_p12 = pnand %p1767_p6, %p1971_p2  ;;  %p1775_p4 = scmp.lt.s32.totalorder %s1773_s0, %s1766_s28 }
  0x82   : > { %p1770_p0 = pneg %p1769_p12  ;;  %p1776_p5 = por %p1775_p4, %p1774_p11 }
  0x84   : > { %p1777_p7 = pnand %p1776_p5, %p1770_p0 }
  0x86   : > { %1780 = shalt.err (!%p1777_p7)
}
  0x87   : > { %1608 = dma.hbm_to_vmem [thread:$0]  (!%p1946_p13), %s2062_s24, 128, %s2066_s7, %s235_s5, %s3076_s10, %s3076_s10, %s3075_s13  }
  0x88   : > { %p3079_p2 = scmp.ne.s32.totalorder %s3073_s30, 0 }
  0x89   : > { %s2095_s14 = sand.u32 (!%p3079_p2), 1, %s1845_s16   ;;  %p3080_p8 = scmp.ne.s32.totalorder (!%p3079_p2), %s3065_s25, 0 }
  0x8a   : > { %257 = sbr.rel (%p3079_p2) target bundleno = 804 (0x324), region = 36  ;;  %s1484_s17 = sshll.u32 (!%p3079_p2), %s2095_s14, 4 }
  0x8b   : > { %s260_s21 = scalar_lea.sflag (!%p3079_p2), [#allocation5], %s2095_s14  ;;  %s263_s27 = scalar_lea.vmem (!%p3079_p2), [#allocation4], %s1484_s17 }
  0x8f   : > { %1824 = dma.done.wait (%p3080_p8), %s260_s21, 256  }
  0x90   : > { %1826 = vsyncadd (%p3080_p8), %s260_s21, 4294967040  ;;  %s268_s29 = sand.u32 1, %s1910_s19   ;;  %s2105_s30 = sshll.u32 %s2095_s14, 3 }
  0x91   : > { %s269_s13 = scalar_lea.sflag [#allocation8], %s268_s29  ;;  %s2108_s10 = scalar_lea.vmem [#allocation7], %s2105_s30 }
  0x92   : > { %1828 = dma.done.wait (%p3080_p8), %s269_s13, 160  }
  0x93   : > { %1830 = vsyncadd (%p3080_p8), %s269_s13, 4294967136  ;;  %s1486_s24 = sshll.u32 %s2095_s14, 1  ;;  %s287_s7 = scalar_lea.sflag [#allocation11], %s2095_s14 }
  0x94   : > { %s2115_s20 = scalar_lea.vmem [#allocation9], %s1486_s24  ;;  %s2119_s5 = scalar_lea.vmem [#allocation10], %s2105_s30 }
  0x95   : > { %1832 = dma.done.wait (%p3080_p8), %s287_s7, 128  }
  0x96   : > { %1834 = vsyncadd (%p3080_p8), %s287_s7, 4294967168  ;;  %vm3059_vm0 = vcmask 1041408   ;;  %v330_v0 = vld [vmem:[%s263_s27] sm:$0x3]  ;;  %v331_v1 = vld [vmem:[%s263_s27 + $0x2] sm:$0x3]  ;;  %v405_v59 = vlaneseq }
  0x97   : > { %v332_v2 = vld [vmem:[%s263_s27 + $0x4] sm:$0x3]  ;;  %v333_v3 = vld [vmem:[%s263_s27 + $0x6] sm:$0x3]  ;;  %v334_v4 = vld [vmem:[%s263_s27 + $0x8] sm:$0x3] }
  0x98   : > { %v335_v5 = vld [vmem:[%s263_s27 + $0xa] sm:$0x3]  ;;  %v336_v6 = vld [vmem:[%s263_s27 + $0xc] sm:$0x3]  ;;  %v337_v7 = vld [vmem:[%s263_s27 + $0xe] sm:$0x3] }
  0x99   : > { %v340_v8 = vsel %vm3059_vm0, %v330_v0, -inf  ;;  %v341_v9 = vsel %vm3059_vm0, %v331_v1, -inf  ;;  %v342_v10 = vsel %vm3059_vm0, %v332_v2, -inf  ;;  %v343_v11 = vsel %vm3059_vm0, %v333_v3, -inf  ;;  %s1572_s22 = sshll.u32 %s1910_s19, 7  ;;  %s329_s9 = scalar_lea.vmem [#allocation12], %s2105_s30 }
  0x9a   : > { %v344_v12 = vsel %vm3059_vm0, %v334_v4, -inf  ;;  %v346_v13 = vsel %vm3059_vm0, %v335_v5, -inf  ;;  %v348_v14 = vsel %vm3059_vm0, %v336_v6, -inf  ;;  %v350_v15 = vsel %vm3059_vm0, %v337_v7, -inf  ;;  %s1333_s28 = sshll.u32 %s329_s9, 4  ;;  %s3004_s17 = scalar_lea.hbm %s3045_s4, %s1572_s22  ;;  %s1334_s28 = int_to_ptr.vmem [resolvable:$true] %s1333_s28 }
  0x9b   : > { %v345_v16 = vmax.f32 %v340_v8, %v344_v12  ;;  %v347_v17 = vmax.f32 %v341_v9, %v346_v13  ;;  %v349_v18 = vmax.f32 %v342_v10, %v348_v14  ;;  %v351_v19 = vmax.f32 %v343_v11, %v350_v15  ;;  %s1320_s21 = scalar_lea.sflag [#allocation6], %s2095_s14  ;;  %s1781_s19 = scalar_lea.vmem %s1334_s28, 128 }
  0x9c   : > { %v2162_v63 = vshrl.u32 %v405_v59, 7  ;;  %vm1861_vm4 = vmmov 1   ;;  %v1862_v12 = vmov 0.0   ;;  %p1782_p13 = scmp.ne.s32.totalorder %s1334_s28, %s1781_s19  ;;  %p3143_p10 = scmp.ne.s32.totalorder %s3066_s26, 0 }
  0x9d   : > { %v352_v20 = vmax.f32 %v345_v16, %v347_v17  ;;  %v353_v21 = vmax.f32 %v349_v18, %v351_v19  ;;  %s1863_s27 = smov [#allocation12]  }
  0x9e   : > { %v500_v15 = vadd.s32 8, %v2162_v63  ;;  %v910_v19 = vadd.s32 128, %v2162_v63  ;;  %p1783_p1 = pnand %p1782_p13, %p3143_p10  ;;  %s1785_s29 = sshll.u32 %s1863_s27, 4  ;;  %s1786_s29 = int_to_ptr.vmem [resolvable:$false] %s1785_s29 }
  0x9f   : > { %v354_v22 = vmax.f32 %v352_v20, %v353_v21  ;;  %s1787_s30 = scalar_lea.vmem %s1786_s29, 256  ;;  %p1788_p9 = scmp.lt.s32.totalorder %s1334_s28, %s1786_s29 }
  0xa0   : > { %v911_v17 = vadd.s32 128, %v500_v15  ;;  %p1784_p3 = pneg %p1783_p1  ;;  %p1789_p6 = scmp.lt.s32.totalorder %s1787_s30, %s1781_s19 }
  0xa1   : > { %v355_v23 = vsub.f32 %v330_v0, %v354_v22  ;;  %v2133_v24 = vsub.f32 %v331_v1, %v354_v22  ;;  %v2135_v25 = vsub.f32 %v332_v2, %v354_v22  ;;  %v2137_v26 = vsub.f32 %v333_v3, %v354_v22  ;;  %v2171_v3 = vld [vmem:[%s2115_s20] sm:$0x3] }
  0xa2   : > { %v2139_v27 = vsub.f32 %v334_v4, %v354_v22  ;;  %v2141_v28 = vsub.f32 %v335_v5, %v354_v22  ;;  %v2145_v32 = vsub.f32 %v336_v6, %v354_v22  ;;  %v2149_v35 = vsub.f32 %v337_v7, %v354_v22  ;;  %p1790_p12 = por %p1789_p6, %p1788_p9 }
  0xa3   : > { %v363_v29 = vmul.f32 1.442695, %v355_v23  ;;  %v365_v30 = vmul.f32 1.442695, %v2133_v24  ;;  %v367_v31 = vmul.f32 1.442695, %v2135_v25 }
  0xa4   : > { %v369_v33 = vmul.f32 1.442695, %v2137_v26  ;;  %v371_v34 = vmul.f32 1.442695, %v2139_v27  ;;  %v373_v36 = vmul.f32 1.442695, %v2141_v28  ;;  %p1791_p0 = pnand %p1790_p12, %p1784_p3 }
  0xa5   : > { %1651 = vpow2.f32 %v363_v29  ;;  %v375_v37 = vmul.f32 1.442695, %v2145_v32  ;;  %v377_v38 = vmul.f32 1.442695, %v2149_v35  ;;  %v2164_v0 = vand.u32 127, %v405_v59 }
  0xa6   : > { %1653 = vpow2.f32 %v365_v30  ;;  %v409_v1 = vmul.u32 128, %v2162_v63  ;;  %vm414_vm2 = vcmp.gt.s32.totalorder %v2171_v3, 0  ;;  %v501_v22 = vadd.s32 16, %v2162_v63 }
  0xa7   : > { %1655 = vpow2.f32 %v367_v31  ;;  %vm586_vm7 = vcmp.lt.s32.totalorder %v2164_v0, %v2162_v63  ;;  %v2238_v18 = vadd.s32 128, %v2164_v0  ;;  %vm587_vm12 = vcmp.lt.s32.totalorder %v2164_v0, %v500_v15 }
  0xa8   : > { %1657 = vpow2.f32 %v369_v33  ;;  %v2168_v2 = vadd.s32 %v409_v1, %v2164_v0  ;;  %v510_v15 = vadd.s32 88, %v2162_v63 }
  0xa9   : > { %1659 = vpow2.f32 %v371_v34  ;;  %vm1086_vm14 = vcmp.lt.s32.totalorder %v2238_v18, %v910_v19  ;;  %vm1087_vm15 = vcmp.lt.s32.totalorder %v2238_v18, %v911_v17  ;;  %v912_v34 = vadd.s32 128, %v501_v22 }
  0xaa   : > { %1661 = vpow2.f32 %v373_v36  ;;  %vm3058_vm1 = vcmp.lt.s32.totalorder %v2168_v2, 200  ;;  %v502_v36 = vadd.s32 24, %v2162_v63 }
  0xab   : > { %1663 = vpow2.f32 %v375_v37  ;;  %vm2177_vm3 = vmand %vm414_vm2, %vm3058_vm1 }
  0xac   : > { %1665 = vpow2.f32 %v377_v38  ;;  %vm429_vm5 = vmxor %vm3058_vm1, %vm1861_vm4  ;;  %v2230_v13 = vsel %vm2177_vm3, 1.0, %v1862_v12 }
  0xad   : > { %vm430_vm6 = vmor %vm2177_vm3, %vm429_vm5  ;;  %v418_v14 = vsel %vm3059_vm0, %v2230_v13, 0.0 }
  0xb2   : > { %v1652_v39 = vpop.eup %1651 }
  0xb3   : > { %v1654_v40 = vpop.eup %1653  ;;  %v379_v41 = vsel %vm3059_vm0, %v1652_v39, 0.0 }
  0xb4   : > { %v1656_v42 = vpop.eup %1655  ;;  %v380_v43 = vsel %vm3059_vm0, %v1654_v40, 0.0 }
  0xb5   : > { %v1658_v44 = vpop.eup %1657  ;;  %v381_v45 = vadd.f32 %v380_v43, %v379_v41  ;;  %v382_v46 = vsel %vm3059_vm0, %v1656_v42, 0.0 }
  0xb6   : > { %v1660_v47 = vpop.eup %1659  ;;  %v384_v48 = vsel %vm3059_vm0, %v1658_v44, 0.0 }
  0xb7   : > { %v1662_v49 = vpop.eup %1661  ;;  %v383_v50 = vadd.f32 %v382_v46, %v381_v45  ;;  %v386_v51 = vsel %vm3059_vm0, %v1660_v47, 0.0  ;;  %v503_v45 = vadd.s32 32, %v2162_v63 }
  0xb8   : > { %v1664_v52 = vpop.eup %1663  ;;  %v388_v54 = vsel %vm3059_vm0, %v1662_v49, 0.0 }
  0xb9   : > { %v385_v53 = vadd.f32 %v384_v48, %v383_v50  ;;  %v1666_v55 = vpop.eup %1665  ;;  %v390_v57 = vsel %vm3059_vm0, %v1664_v52, 0.0  ;;  %v914_v1 = vadd.s32 128, %v503_v45 }
  0xba   : > { %v392_v60 = vsel %vm3059_vm0, %v1666_v55, 0.0  ;;  %vm590_vm0 = vcmp.lt.s32.totalorder %v2164_v0, %v503_v45 }
  0xbb   : > { %v387_v56 = vadd.f32 %v386_v51, %v385_v53  ;;  %v2334_v53 = vadd.s32 40, %v2162_v63 }
  0xbd   : > { %v389_v58 = vadd.f32 %v388_v54, %v387_v56  ;;  %v913_v54 = vadd.s32 128, %v502_v36 }
  0xbf   : > { %v391_v61 = vadd.f32 %v390_v57, %v389_v58 }
  0xc1   : > { %v393_v62 = vadd.f32 %v392_v60, %v391_v61 }
  0xc3   : > { %1667 = vlog2.f32 %v393_v62  ;;  %v505_v62 = vadd.s32 48, %v2162_v63 }
  0xc5   : > { %v2446_v41 = vadd.s32 128, %v505_v62 }
  0xd0   : > { %v1668_v4 = vpop.eup %1667 }
  0xd1   : > { %v2181_v6 = vmul.f32 0.6931472, %v1668_v4 }
  0xd3   : > { %v2186_v7 = vsub.f32 %v355_v23, %v2181_v6 }
  0xd5   : > { %v404_v8 = vsub.f32 0.0, %v2186_v7 }
  0xd7   : > { %v431_v9 = vsel %vm430_vm6, -inf, %v404_v8 }
  0xd8   : > { %494 = vst [vmem:[#allocation2] sm:$0x3] %v431_v9  }
  0xdf   : > { %v2191_v10 = vld [vmem:[#allocation2] ss:$0 sm:$0xff]  ;;  %v2193_v11 = vld [vmem:[#allocation2 + $0x1] ss:$0 sm:$0xff] }
  0xe0   : > { %522 = vxpose.xlu0.b32.start [1/16] %v2191_v10, 128  ;;  %878 = vxpose.xlu1.b32.start [1/16] %v2193_v11, 128 }
  0xe4   : > { %523 = vxpose.xlu0.b32.cont [2/16] %v2191_v10, 128  ;;  %879 = vxpose.xlu1.b32.cont [2/16] %v2193_v11, 128 }
  0xe8   : > { %524 = vxpose.xlu0.b32.cont [3/16] %v2191_v10, 128  ;;  %880 = vxpose.xlu1.b32.cont [3/16] %v2193_v11, 128 }
  0xec   : > { %525 = vxpose.xlu0.b32.cont [4/16] %v2191_v10, 128  ;;  %881 = vxpose.xlu1.b32.cont [4/16] %v2193_v11, 128 }
  0xf0   : > { %526 = vxpose.xlu0.b32.cont [5/16] %v2191_v10, 128  ;;  %882 = vxpose.xlu1.b32.cont [5/16] %v2193_v11, 128 }
  0xf4   : > { %527 = vxpose.xlu0.b32.cont [6/16] %v2191_v10, 128  ;;  %883 = vxpose.xlu1.b32.cont [6/16] %v2193_v11, 128 }
  0xf8   : > { %528 = vxpose.xlu0.b32.cont [7/16] %v2191_v10, 128  ;;  %884 = vxpose.xlu1.b32.cont [7/16] %v2193_v11, 128 }
  0xfc   : > { %529 = vxpose.xlu0.b32.cont [8/16] %v2191_v10, 128  ;;  %885 = vxpose.xlu1.b32.cont [8/16] %v2193_v11, 128 }
 0x100   : > { %530 = vxpose.xlu0.b32.cont [9/16] %v2191_v10, 128  ;;  %886 = vxpose.xlu1.b32.cont [9/16] %v2193_v11, 128 }
 0x104   : > { %531 = vxpose.xlu0.b32.cont [10/16] %v2191_v10, 128  ;;  %887 = vxpose.xlu1.b32.cont [10/16] %v2193_v11, 128 }
 0x108   : > { %532 = vxpose.xlu0.b32.cont [11/16] %v2191_v10, 128  ;;  %888 = vxpose.xlu1.b32.cont [11/16] %v2193_v11, 128 }
 0x10c   : > { %533 = vxpose.xlu0.b32.cont [12/16] %v2191_v10, 128  ;;  %889 = vxpose.xlu1.b32.cont [12/16] %v2193_v11, 128 }
 0x110   : > { %534 = vxpose.xlu0.b32.cont [13/16] %v2191_v10, 128  ;;  %890 = vxpose.xlu1.b32.cont [13/16] %v2193_v11, 128 }
 0x114   : > { %535 = vxpose.xlu0.b32.cont [14/16] %v2191_v10, 128  ;;  %891 = vxpose.xlu1.b32.cont [14/16] %v2193_v11, 128 }
 0x118   : > { %536 = vxpose.xlu0.b32.cont [15/16] %v2191_v10, 128  ;;  %892 = vxpose.xlu1.b32.cont [15/16] %v2193_v11, 128 }
 0x11c   : > { %537 = vxpose.xlu0.b32.end [16/16] %v2191_v10, 128  ;;  %893 = vxpose.xlu1.b32.end [16/16] %v2193_v11, 128 }
 0x149   : > { %419 = vadd.xlane.f32.xlu0 %v418_v14 }
 0x15c   : > { %v538_v16 = vpop.trf.xlu0  ;;  %v2241_v20 = vpop.trf.xlu1 }
 0x15d   : > { %vm554_vm8 = vcmp.gt.f32.partialorder %v2191_v10, %v538_v16  ;;  %vm570_vm9 = vcmp.eq.f32.partialorder %v2191_v10, %v538_v16  ;;  %vm690_vm10 = vcmp.gt.f32.partialorder %v2193_v11, %v538_v16  ;;  %vm926_vm6 = vcmp.gt.f32.partialorder %v2191_v10, %v2241_v20 }
 0x15e   : > { %vm602_vm11 = vmand %vm570_vm9, %vm586_vm7  ;;  %v1517_v21 = vsel %vm690_vm10, 1.0, %v1862_v12  ;;  %vm942_vm7 = vcmp.eq.f32.partialorder %v2191_v10, %v2241_v20  ;;  %vm588_vm10 = vcmp.lt.s32.totalorder %v2164_v0, %v501_v22  ;;  %v506_v22 = vadd.s32 56, %v2162_v63 }
 0x15f   : > { %vm618_vm13 = vmor %vm554_vm8, %vm602_vm11  ;;  %vm1070_vm8 = vcmp.eq.f32.partialorder %v2193_v11, %v2241_v20 }
 0x160   : > { %v539_v23 = vpop.trf.xlu0  ;;  %v1500_v29 = vsel %vm618_vm13, 1.0, %v1862_v12  ;;  %v895_v30 = vpop.trf.xlu1  ;;  %vm2292_vm1 = vmor %vm926_vm6, %vm942_vm7 }
 0x161   : > { %vm555_vm2 = vcmp.gt.f32.partialorder %v2191_v10, %v539_v23  ;;  %vm571_vm3 = vcmp.eq.f32.partialorder %v2191_v10, %v539_v23  ;;  %vm691_vm4 = vcmp.gt.f32.partialorder %v2193_v11, %v539_v23  ;;  %v802_v31 = vadd.f32 %v1517_v21, %v1500_v29 }
 0x162   : > { %vm603_vm5 = vmand %vm571_vm3, %vm587_vm12  ;;  %v1518_v33 = vsel %vm691_vm4, 1.0, %v1862_v12  ;;  %vm1071_vm11 = vcmp.eq.f32.partialorder %v2193_v11, %v895_v30  ;;  %vm927_vm12 = vcmp.gt.f32.partialorder %v2191_v10, %v895_v30  ;;  %vm943_vm13 = vcmp.eq.f32.partialorder %v2191_v10, %v895_v30 }
 0x163   : > { %vm619_vm9 = vmor %vm555_vm2, %vm603_vm5  ;;  %818 = vxpose.xlu1.b32.start [1/16] %v802_v31, 128  ;;  %v1534_v8 = vsel %vm2292_vm1, 1.0, %v1862_v12 }
 0x164   : > { %v540_v37 = vpop.trf.xlu0  ;;  %v1501_v38 = vsel %vm619_vm9, 1.0, %v1862_v12  ;;  %v896_v39 = vpop.trf.xlu1  ;;  %vm2276_vm5 = vmand %vm1070_vm8, %vm1086_vm14 }
 0x165   : > { %vm556_vm3 = vcmp.gt.f32.partialorder %v2191_v10, %v540_v37  ;;  %vm572_vm2 = vcmp.eq.f32.partialorder %v2191_v10, %v540_v37  ;;  %vm692_vm4 = vcmp.gt.f32.partialorder %v2193_v11, %v540_v37  ;;  %v803_v40 = vadd.f32 %v1518_v33, %v1501_v38  ;;  %vm2282_vm9 = vmand %vm1071_vm11, %vm1087_vm15 }
 0x166   : > { %vm604_vm14 = vmand %vm572_vm2, %vm588_vm10  ;;  %v1519_v44 = vsel %vm692_vm4, 1.0, %v1862_v12  ;;  %vm1055_vm15 = vcmp.gt.f32.partialorder %v2193_v11, %v895_v30  ;;  %vm589_vm11 = vcmp.lt.s32.totalorder %v2164_v0, %v502_v36  ;;  %vm928_vm7 = vcmp.gt.f32.partialorder %v2191_v10, %v896_v39 }
 0x167   : > { %vm620_vm8 = vmor %vm556_vm3, %vm604_vm14  ;;  %819 = vxpose.xlu1.b32.cont [2/16] %v803_v40, 128  ;;  %vm944_vm10 = vcmp.eq.f32.partialorder %v2191_v10, %v896_v39  ;;  %v507_v30 = vadd.s32 64, %v2162_v63  ;;  %v915_v40 = vadd.s32 128, %v2334_v53 }
 0x168   : > { %v541_v46 = vpop.trf.xlu0  ;;  %v1502_v47 = vsel %vm620_vm8, 1.0, %v1862_v12  ;;  %vm2308_vm6 = vmor %vm927_vm12, %vm943_vm13  ;;  %v2315_v49 = vpop.trf.xlu1  ;;  %vm1056_vm8 = vcmp.gt.f32.partialorder %v2193_v11, %v896_v39 }
 0x169   : > { %vm557_vm2 = vcmp.gt.f32.partialorder %v2191_v10, %v541_v46  ;;  %vm573_vm4 = vcmp.eq.f32.partialorder %v2191_v10, %v541_v46  ;;  %vm693_vm14 = vcmp.gt.f32.partialorder %v2193_v11, %v541_v46  ;;  %v804_v50 = vadd.f32 %v1519_v44, %v1502_v47  ;;  %vm2324_vm12 = vmor %vm1055_vm15, %vm2282_vm9 }
 0x16a   : > { %vm605_vm13 = vmand %vm573_vm4, %vm589_vm11  ;;  %v1520_v52 = vsel %vm693_vm14, 1.0, %v1862_v12  ;;  %vm3095_vm11 = vcmp.lt.s32.totalorder %v2238_v18, %v912_v34  ;;  %v1535_v19 = vsel %vm2308_vm6, 1.0, %v1862_v12  ;;  %v511_v34 = vadd.s32 96, %v2162_v63 }
 0x16b   : > { %vm621_vm3 = vmor %vm557_vm2, %vm605_vm13  ;;  %820 = vxpose.xlu1.b32.cont [3/16] %v804_v50, 128  ;;  %vm3096_vm2 = vcmp.eq.f32.partialorder %v2193_v11, %v896_v39 }
 0x16c   : > { %v542_v55 = vpop.trf.xlu0  ;;  %v1503_v56 = vsel %vm621_vm3, 1.0, %v1862_v12  ;;  %vm2343_vm15 = vmor %vm928_vm7, %vm944_vm10  ;;  %v2351_v58 = vpop.trf.xlu1 }
 0x16d   : > { %vm1104_vm4 = vmand %vm3096_vm2, %vm3095_vm11  ;;  %vm558_vm14 = vcmp.gt.f32.partialorder %v2191_v10, %v542_v55  ;;  %vm574_vm13 = vcmp.eq.f32.partialorder %v2191_v10, %v542_v55  ;;  %vm694_vm3 = vcmp.gt.f32.partialorder %v2193_v11, %v542_v55  ;;  %v805_v59 = vadd.f32 %v1520_v52, %v1503_v56 }
 0x16e   : > { %vm2358_vm7 = vmor %vm1056_vm8, %vm1104_vm4  ;;  %v1521_v61 = vsel %vm694_vm3, 1.0, %v1862_v12  ;;  %vm929_vm11 = vcmp.gt.f32.partialorder %v2191_v10, %v2315_v49  ;;  %vm945_vm2 = vcmp.eq.f32.partialorder %v2191_v10, %v2315_v49  ;;  %vm591_vm8 = vcmp.lt.s32.totalorder %v2164_v0, %v2334_v53 }
 0x16f   : > { %vm606_vm10 = vmand %vm574_vm13, %vm590_vm0  ;;  %821 = vxpose.xlu1.b32.cont [4/16] %v805_v59, 128  ;;  %vm3099_vm0 = vcmp.gt.f32.partialorder %v2193_v11, %v2241_v20  ;;  %v1551_v20 = vsel %vm2324_vm12, 1.0, %v1862_v12  ;;  %vm930_vm6 = vcmp.gt.f32.partialorder %v2191_v10, %v2351_v58  ;;  %vm946_vm12 = vcmp.eq.f32.partialorder %v2191_v10, %v2351_v58 }
 0x170   : > { %vm622_vm9 = vmor %vm558_vm14, %vm606_vm10  ;;  %v543_v4 = vpop.trf.xlu0  ;;  %v2382_v9 = vpop.trf.xlu1  ;;  %vm1057_vm14 = vcmp.gt.f32.partialorder %v2193_v11, %v2315_v49  ;;  %v1167_v37 = vadd.f32 %v1551_v20, %v1535_v19  ;;  %v1536_v38 = vsel %vm2343_vm15, 1.0, %v1862_v12  ;;  %v1552_v39 = vsel %vm2358_vm7, 1.0, %v1862_v12 }
 0x171   : > { %v1504_v5 = vsel %vm622_vm9, 1.0, %v1862_v12  ;;  %vm1118_vm4 = vmor %vm3099_vm0, %vm2276_vm5  ;;  %vm559_vm3 = vcmp.gt.f32.partialorder %v2191_v10, %v543_v4  ;;  %vm575_vm9 = vcmp.eq.f32.partialorder %v2191_v10, %v543_v4  ;;  %vm695_vm10 = vcmp.gt.f32.partialorder %v2193_v11, %v543_v4 }
 0x172   : > { %v806_v14 = vadd.f32 %v1521_v61, %v1504_v5  ;;  %vm2393_vm1 = vmor %vm929_vm11, %vm945_vm2  ;;  %v1522_v16 = vsel %vm695_vm10, 1.0, %v1862_v12  ;;  %vm592_vm0 = vcmp.lt.s32.totalorder %v2164_v0, %v505_v62  ;;  %v1550_v17 = vsel %vm1118_vm4, 1.0, %v1862_v12 }
 0x173   : > { %vm607_vm5 = vmand %vm575_vm9, %vm591_vm8  ;;  %v1166_v21 = vadd.f32 %v1550_v17, %v1534_v8  ;;  %vm3102_vm11 = vcmp.lt.s32.totalorder %v2238_v18, %v913_v54  ;;  %vm3103_vm2 = vcmp.eq.f32.partialorder %v2193_v11, %v2315_v49  ;;  %vm1058_vm7 = vcmp.gt.f32.partialorder %v2193_v11, %v2351_v58 }
 0x174   : > { %vm623_vm13 = vmor %vm559_vm3, %vm607_vm5  ;;  %822 = vxpose.xlu1.b32.cont [5/16] %v806_v14, 128  ;;  %v544_v23 = vpop.trf.xlu0  ;;  %v2420_v31 = vpop.trf.xlu1  ;;  %vm1090_vm5 = vcmp.lt.s32.totalorder %v2238_v18, %v914_v1  ;;  %v1168_v48 = vadd.f32 %v1552_v39, %v1536_v38  ;;  %v1537_v50 = vsel %vm2393_vm1, 1.0, %v1862_v12  ;;  %v508_v52 = vadd.s32 72, %v2162_v63 }
 0x175   : > { %v1505_v29 = vsel %vm623_vm13, 1.0, %v1862_v12  ;;  %vm1105_vm8 = vmand %vm3103_vm2, %vm3102_vm11  ;;  %vm560_vm4 = vcmp.gt.f32.partialorder %v2191_v10, %v544_v23  ;;  %vm576_vm13 = vcmp.eq.f32.partialorder %v2191_v10, %v544_v23  ;;  %vm696_vm3 = vcmp.gt.f32.partialorder %v2193_v11, %v544_v23 }
 0x176   : > { %v807_v33 = vadd.f32 %v1522_v16, %v1505_v29  ;;  %vm2428_vm9 = vmor %vm1057_vm14, %vm1105_vm8  ;;  %v1523_v36 = vsel %vm696_vm3, 1.0, %v1862_v12  ;;  %1182 = vxpose.xlu0.b32.start [1/16] %v1166_v21, 128  ;;  %vm1074_vm11 = vcmp.eq.f32.partialorder %v2193_v11, %v2351_v58  ;;  %vm593_vm14 = vcmp.lt.s32.totalorder %v2164_v0, %v506_v22 }
 0x177   : > { %vm608_vm10 = vmand %vm576_vm13, %vm592_vm0  ;;  %vm594_vm13 = vcmp.lt.s32.totalorder %v2164_v0, %v507_v30  ;;  %vm931_vm3 = vcmp.gt.f32.partialorder %v2191_v10, %v2382_v9  ;;  %v1553_v51 = vsel %vm2428_vm9, 1.0, %v1862_v12  ;;  %v2488_v53 = vadd.s32 128, %v506_v22 }
 0x178   : > { %vm624_vm2 = vmor %vm560_vm4, %vm608_vm10  ;;  %823 = vxpose.xlu1.b32.cont [6/16] %v807_v33, 128  ;;  %v545_v42 = vpop.trf.xlu0  ;;  %v2461_v45 = vpop.trf.xlu1  ;;  %vm947_vm10 = vcmp.eq.f32.partialorder %v2191_v10, %v2382_v9  ;;  %v2490_v54 = vadd.s32 128, %v507_v30  ;;  %vm1091_vm1 = vcmp.lt.s32.totalorder %v2238_v18, %v915_v40  ;;  %v1169_v62 = vadd.f32 %v1553_v51, %v1537_v50 }
 0x179   : > { %v1506_v43 = vsel %vm624_vm2, 1.0, %v1862_v12  ;;  %vm2455_vm15 = vmor %vm930_vm6, %vm946_vm12  ;;  %vm561_vm0 = vcmp.gt.f32.partialorder %v2191_v10, %v545_v42  ;;  %vm577_vm8 = vcmp.eq.f32.partialorder %v2191_v10, %v545_v42  ;;  %vm697_vm4 = vcmp.gt.f32.partialorder %v2193_v11, %v545_v42 }
 0x17a   : > { %v808_v46 = vadd.f32 %v1523_v36, %v1506_v43  ;;  %vm2471_vm6 = vmand %vm1074_vm11, %vm1090_vm5  ;;  %1183 = vxpose.xlu0.b32.cont [2/16] %v1167_v37, 128  ;;  %v1524_v49 = vsel %vm697_vm4, 1.0, %v1862_v12  ;;  %vm1059_vm4 = vcmp.gt.f32.partialorder %v2193_v11, %v2382_v9  ;;  %v1538_v1 = vsel %vm2455_vm15, 1.0, %v1862_v12 }
 0x17b   : > { %vm609_vm12 = vmand %vm577_vm8, %vm593_vm14  ;;  %v509_v5 = vadd.s32 80, %v2162_v63  ;;  %vm948_vm15 = vcmp.eq.f32.partialorder %v2191_v10, %v2420_v31  ;;  %v2549_v19 = vadd.s32 128, %v508_v52  ;;  %v2627_v50 = vadd.s32 128, %v511_v34 }
 0x17c   : > { %vm625_vm2 = vmor %vm561_vm0, %vm609_vm12  ;;  %824 = vxpose.xlu1.b32.cont [7/16] %v808_v46, 128  ;;  %v546_v55 = vpop.trf.xlu0  ;;  %v2503_v59 = vpop.trf.xlu1  ;;  %vm1075_vm0 = vcmp.eq.f32.partialorder %v2193_v11, %v2382_v9  ;;  %vm595_vm12 = vcmp.lt.s32.totalorder %v2164_v0, %v508_v52  ;;  %v2634_v51 = vadd.s32 112, %v2162_v63 }
 0x17d   : > { %vm2497_vm5 = vmor %vm1058_vm7, %vm2471_vm6  ;;  %v1507_v57 = vsel %vm625_vm2, 1.0, %v1862_v12  ;;  %vm562_vm9 = vcmp.gt.f32.partialorder %v2191_v10, %v546_v55  ;;  %vm578_vm11 = vcmp.eq.f32.partialorder %v2191_v10, %v546_v55  ;;  %vm698_vm14 = vcmp.gt.f32.partialorder %v2193_v11, %v546_v55 }
 0x17e   : > { %vm2514_vm7 = vmor %vm931_vm3, %vm947_vm10  ;;  %v1525_v60 = vsel %vm698_vm14, 1.0, %v1862_v12  ;;  %1184 = vxpose.xlu0.b32.cont [3/16] %v1168_v48, 128  ;;  %v809_v61 = vadd.f32 %v1524_v49, %v1507_v57  ;;  %v1554_v4 = vsel %vm2497_vm5, 1.0, %v1862_v12  ;;  %vm932_vm3 = vcmp.gt.f32.partialorder %v2191_v10, %v2420_v31 }
 0x17f   : > { %vm610_vm8 = vmand %vm578_vm11, %vm594_vm13  ;;  %vm1092_vm11 = vcmp.lt.s32.totalorder %v2238_v18, %v2446_v41  ;;  %vm1076_vm14 = vcmp.eq.f32.partialorder %v2193_v11, %v2420_v31  ;;  %v1170_v20 = vadd.f32 %v1554_v4, %v1538_v1  ;;  %v1539_v9 = vsel %vm2514_vm7, 1.0, %v1862_v12 }
 0x180   : > { %vm626_vm6 = vmor %vm562_vm9, %vm610_vm8  ;;  %825 = vxpose.xlu1.b32.cont [8/16] %v809_v61, 128  ;;  %v547_v8 = vpop.trf.xlu0  ;;  %v2541_v16 = vpop.trf.xlu1  ;;  %vm596_vm8 = vcmp.lt.s32.totalorder %v2164_v0, %v509_v5  ;;  %v2563_v23 = vadd.s32 128, %v509_v5  ;;  %vm597_vm7 = vcmp.lt.s32.totalorder %v2164_v0, %v510_v15  ;;  %v2599_v41 = vadd.s32 128, %v510_v15 }
 0x181   : > { %vm1107_vm13 = vmand %vm1075_vm0, %vm1091_vm1  ;;  %v1508_v14 = vsel %vm626_vm6, 1.0, %v1862_v12  ;;  %vm563_vm10 = vcmp.gt.f32.partialorder %v2191_v10, %v547_v8  ;;  %vm579_vm2 = vcmp.eq.f32.partialorder %v2191_v10, %v547_v8  ;;  %vm699_vm5 = vcmp.gt.f32.partialorder %v2193_v11, %v547_v8 }
 0x182   : > { %vm1123_vm1 = vmor %vm1059_vm4, %vm1107_vm13  ;;  %v810_v17 = vadd.f32 %v1525_v60, %v1508_v14  ;;  %1185 = vxpose.xlu0.b32.cont [4/16] %v1169_v62, 128  ;;  %v1526_v21 = vsel %vm699_vm5, 1.0, %v1862_v12  ;;  %vm949_vm5 = vcmp.eq.f32.partialorder %v2191_v10, %v2461_v45  ;;  %v2682_v5 = vadd.s32 128, %v2634_v51 }
 0x183   : > { %vm611_vm9 = vmand %vm579_vm2, %vm595_vm12  ;;  %v1555_v22 = vsel %vm1123_vm1, 1.0, %v1862_v12  ;;  %vm933_vm2 = vcmp.gt.f32.partialorder %v2191_v10, %v2461_v45 }
 0x184   : > { %vm627_vm0 = vmor %vm563_vm10, %vm611_vm9  ;;  %826 = vxpose.xlu1.b32.cont [9/16] %v810_v17, 128  ;;  %v548_v29 = vpop.trf.xlu0  ;;  %v2578_v36 = vpop.trf.xlu1  ;;  %v1171_v38 = vadd.f32 %v1555_v22, %v1539_v9 }
 0x185   : > { %vm2571_vm4 = vmor %vm932_vm3, %vm948_vm15  ;;  %v1509_v33 = vsel %vm627_vm0, 1.0, %v1862_v12  ;;  %vm564_vm6 = vcmp.gt.f32.partialorder %v2191_v10, %v548_v29  ;;  %vm580_vm12 = vcmp.eq.f32.partialorder %v2191_v10, %v548_v29  ;;  %vm700_vm13 = vcmp.gt.f32.partialorder %v2193_v11, %v548_v29 }
 0x186   : > { %vm1060_vm3 = vcmp.gt.f32.partialorder %v2193_v11, %v2420_v31  ;;  %vm1108_vm15 = vmand %vm1076_vm14, %vm1092_vm11  ;;  %1186 = vxpose.xlu0.b32.cont [5/16] %v1170_v20, 128  ;;  %v811_v37 = vadd.f32 %v1526_v21, %v1509_v33  ;;  %v1527_v39 = vsel %vm700_vm13, 1.0, %v1862_v12  ;;  %v1540_v40 = vsel %vm2571_vm4, 1.0, %v1862_v12 }
 0x187   : > { %vm612_vm10 = vmand %vm580_vm12, %vm596_vm8  ;;  %v2602_v31 = vadd.s32 104, %v2162_v63  ;;  %vm1093_vm11 = vcmp.lt.s32.totalorder %v2238_v18, %v2488_v53  ;;  %vm1077_vm14 = vcmp.eq.f32.partialorder %v2193_v11, %v2461_v45  ;;  %vm598_vm0 = vcmp.lt.s32.totalorder %v2164_v0, %v511_v34 }
 0x188   : > { %vm628_vm1 = vmor %vm564_vm6, %vm612_vm10  ;;  %827 = vxpose.xlu1.b32.cont [10/16] %v811_v37, 128  ;;  %v549_v42 = vpop.trf.xlu0  ;;  %v2610_v44 = vpop.trf.xlu1  ;;  %vm1094_vm10 = vcmp.lt.s32.totalorder %v2238_v18, %v2490_v54  ;;  %v397_v34 = vsub.f32 %v2133_v24, %v2181_v6 }
 0x189   : > { %vm1124_vm9 = vmor %vm1060_vm3, %vm1108_vm15  ;;  %v1510_v43 = vsel %vm628_vm1, 1.0, %v1862_v12  ;;  %vm565_vm8 = vcmp.gt.f32.partialorder %v2191_v10, %v549_v42  ;;  %vm581_vm4 = vcmp.eq.f32.partialorder %v2191_v10, %v549_v42  ;;  %vm701_vm6 = vcmp.gt.f32.partialorder %v2193_v11, %v549_v42 }
 0x18a   : > { %v1556_v46 = vsel %vm1124_vm9, 1.0, %v1862_v12  ;;  %vm997_vm12 = vmor %vm933_vm2, %vm949_vm5  ;;  %v1528_v47 = vsel %vm701_vm6, 1.0, %v1862_v12  ;;  %vm1061_vm3 = vcmp.gt.f32.partialorder %v2193_v11, %v2461_v45  ;;  %1187 = vxpose.xlu0.b32.cont [6/16] %v1171_v38, 128  ;;  %v812_v48 = vadd.f32 %v1527_v39, %v1510_v43 }
 0x18b   : > { %vm613_vm13 = vmand %vm581_vm4, %vm597_vm7  ;;  %v1172_v49 = vadd.f32 %v1556_v46, %v1540_v40  ;;  %vm599_vm2 = vcmp.lt.s32.totalorder %v2164_v0, %v2602_v31  ;;  %v1541_v52 = vsel %vm997_vm12, 1.0, %v1862_v12  ;;  %vm934_vm5 = vcmp.gt.f32.partialorder %v2191_v10, %v2503_v59 }
 0x18c   : > { %vm629_vm15 = vmor %vm565_vm8, %vm613_vm13  ;;  %828 = vxpose.xlu1.b32.cont [11/16] %v812_v48, 128  ;;  %v550_v55 = vpop.trf.xlu0  ;;  %vm950_vm1 = vcmp.eq.f32.partialorder %v2191_v10, %v2503_v59  ;;  %vm1078_vm6 = vcmp.eq.f32.partialorder %v2193_v11, %v2503_v59  ;;  %v2660_v58 = vadd.s32 128, %v2602_v31  ;;  %v2663_v45 = vadd.s32 120, %v2162_v63  ;;  %v2665_v60 = vpop.trf.xlu1 }
 0x18d   : > { %vm1109_vm7 = vmand %vm1077_vm14, %vm1093_vm11  ;;  %v1511_v56 = vsel %vm629_vm15, 1.0, %v1862_v12  ;;  %vm566_vm8 = vcmp.gt.f32.partialorder %v2191_v10, %v550_v55  ;;  %vm582_vm4 = vcmp.eq.f32.partialorder %v2191_v10, %v550_v55  ;;  %vm702_vm11 = vcmp.gt.f32.partialorder %v2193_v11, %v550_v55 }
 0x18e   : > { %vm1125_vm9 = vmor %vm1061_vm3, %vm1109_vm7  ;;  %v813_v53 = vadd.f32 %v1528_v47, %v1511_v56  ;;  %1188 = vxpose.xlu0.b32.cont [7/16] %v1172_v49, 128  ;;  %v1529_v61 = vsel %vm702_vm11, 1.0, %v1862_v12  ;;  %vm1062_vm13 = vcmp.gt.f32.partialorder %v2193_v11, %v2503_v59  ;;  %vm600_vm15 = vcmp.lt.s32.totalorder %v2164_v0, %v2634_v51 }
 0x18f   : > { %v1557_v57 = vsel %vm1125_vm9, 1.0, %v1862_v12  ;;  %vm614_vm14 = vmand %vm582_vm4, %vm598_vm0  ;;  %vm1095_vm0 = vcmp.lt.s32.totalorder %v2238_v18, %v2549_v19  ;;  %vm1096_vm7 = vcmp.lt.s32.totalorder %v2238_v18, %v2563_v23  ;;  %vm935_vm11 = vcmp.gt.f32.partialorder %v2191_v10, %v2541_v16 }
 0x190   : > { %vm630_vm12 = vmor %vm566_vm8, %vm614_vm14  ;;  %v1173_v62 = vadd.f32 %v1557_v57, %v1541_v52  ;;  %829 = vxpose.xlu1.b32.cont [12/16] %v813_v53, 128  ;;  %v551_v1 = vpop.trf.xlu0  ;;  %vm951_vm14 = vcmp.eq.f32.partialorder %v2191_v10, %v2541_v16  ;;  %v2706_v14 = vadd.s32 128, %v2663_v45  ;;  %v2725_v21 = vpop.trf.xlu1  ;;  %v398_v23 = vsub.f32 %v2135_v25, %v2181_v6 }
 0x191   : > { %vm998_vm3 = vmor %vm934_vm5, %vm950_vm1  ;;  %v1512_v4 = vsel %vm630_vm12, 1.0, %v1862_v12  ;;  %vm567_vm1 = vcmp.gt.f32.partialorder %v2191_v10, %v551_v1  ;;  %vm583_vm9 = vcmp.eq.f32.partialorder %v2191_v10, %v551_v1  ;;  %vm703_vm8 = vcmp.gt.f32.partialorder %v2193_v11, %v551_v1 }
 0x192   : > { %v1542_v8 = vsel %vm998_vm3, 1.0, %v1862_v12  ;;  %vm1110_vm5 = vmand %vm1078_vm6, %vm1094_vm10  ;;  %1189 = vxpose.xlu0.b32.cont [8/16] %v1173_v62, 128  ;;  %v814_v54 = vadd.f32 %v1529_v61, %v1512_v4  ;;  %v1530_v59 = vsel %vm703_vm8, 1.0, %v1862_v12  ;;  %vm1063_vm12 = vcmp.gt.f32.partialorder %v2193_v11, %v2541_v16 }
 0x193   : > { %vm1126_vm4 = vmor %vm1062_vm13, %vm1110_vm5  ;;  %vm1079_vm13 = vcmp.eq.f32.partialorder %v2193_v11, %v2541_v16  ;;  %vm936_vm5 = vcmp.gt.f32.partialorder %v2191_v10, %v2578_v36  ;;  %v399_v40 = vsub.f32 %v2137_v26, %v2181_v6  ;;  %v400_v42 = vsub.f32 %v2139_v27, %v2181_v6 }
 0x194   : > { %v1558_v15 = vsel %vm1126_vm4, 1.0, %v1862_v12  ;;  %vm615_vm6 = vmand %vm583_vm9, %vm599_vm2  ;;  %830 = vxpose.xlu1.b32.cont [13/16] %v814_v54, 128  ;;  %v552_v17 = vpop.trf.xlu0  ;;  %vm952_vm4 = vcmp.eq.f32.partialorder %v2191_v10, %v2578_v36  ;;  %v2797_v24 = vpop.trf.xlu1  ;;  %vm1083_vm2 = vcmp.eq.f32.partialorder %v2193_v11, %v2725_v21  ;;  %v401_v27 = vsub.f32 %v2141_v28, %v2181_v6 }
 0x195   : > { %vm631_vm3 = vmor %vm567_vm1, %vm615_vm6  ;;  %v1174_v20 = vadd.f32 %v1558_v15, %v1542_v8  ;;  %vm584_vm9 = vcmp.eq.f32.partialorder %v2191_v10, %v552_v17  ;;  %vm704_vm8 = vcmp.gt.f32.partialorder %v2193_v11, %v552_v17  ;;  %vm1080_vm6 = vcmp.eq.f32.partialorder %v2193_v11, %v2578_v36 }
 0x196   : > { %vm999_vm1 = vmor %vm935_vm11, %vm951_vm14  ;;  %v1513_v9 = vsel %vm631_vm3, 1.0, %v1862_v12  ;;  %vm568_vm14 = vcmp.gt.f32.partialorder %v2191_v10, %v552_v17  ;;  %v1531_v16 = vsel %vm704_vm8, 1.0, %v1862_v12  ;;  %vm433_vm8 = vcmp.eq.s32.totalorder %v2171_v3, 1 }
 0x197   : > { %v1543_v22 = vsel %vm999_vm1, 1.0, %v1862_v12  ;;  %vm1111_vm11 = vmand %vm1079_vm13, %vm1095_vm0  ;;  %1190 = vxpose.xlu0.b32.cont [9/16] %v1174_v20, 128  ;;  %v815_v29 = vadd.f32 %v1530_v59, %v1513_v9  ;;  %vm953_vm1 = vcmp.eq.f32.partialorder %v2191_v10, %v2610_v44  ;;  %vm434_vm13 = vcmp.eq.s32.totalorder %v2171_v3, 2 }
 0x198   : > { %vm1127_vm3 = vmor %vm1063_vm12, %vm1111_vm11  ;;  %v553_v30 = vpop.trf.xlu0  ;;  %vm3116_vm11 = vcmp.gt.f32.partialorder %v2193_v11, %v2578_v36  ;;  %vm956_vm0 = vcmp.eq.f32.partialorder %v2191_v10, %v2797_v24  ;;  %v1492_v26 = vsel %vm433_vm8, 1.0, %v1862_v12  ;;  %v1493_v43 = vsel %vm434_vm13, 1.0, %v1862_v12 }
 0x199   : > { %v1559_v19 = vsel %vm1127_vm3, 1.0, %v1862_v12  ;;  %vm616_vm12 = vmand %vm584_vm9, %vm600_vm15  ;;  %831 = vxpose.xlu1.b32.cont [14/16] %v815_v29, 128  ;;  %vm432_vm9 = vcmp.eq.s32.totalorder %v2171_v3, 0  ;;  %vm435_vm15 = vcmp.eq.s32.totalorder %v2171_v3, 3  ;;  %vm3119_vm13 = vcmp.lt.s32.totalorder %v2238_v18, %v2599_v41 }
 0x19a   : > { %vm632_vm10 = vmor %vm568_vm14, %vm616_vm12  ;;  %v1175_v33 = vadd.f32 %v1559_v19, %v1543_v22  ;;  %vm585_vm14 = vcmp.eq.f32.partialorder %v2191_v10, %v553_v30  ;;  %vm705_vm12 = vcmp.gt.f32.partialorder %v2193_v11, %v553_v30  ;;  %v1491_v25 = vsel %vm432_vm9, 1.0, %v1862_v12 }
 0x19b   : > { %vm1000_vm3 = vmor %vm936_vm5, %vm952_vm4  ;;  %v1514_v37 = vsel %vm632_vm10, 1.0, %v1862_v12  ;;  %vm569_vm10 = vcmp.gt.f32.partialorder %v2191_v10, %v553_v30  ;;  %vm1099_vm4 = vcmp.lt.s32.totalorder %v2238_v18, %v2660_v58  ;;  %v1532_v36 = vsel %vm705_vm12, 1.0, %v1862_v12 }
 0x19c   : > { %v1544_v38 = vsel %vm1000_vm3, 1.0, %v1862_v12  ;;  %vm1112_vm5 = vmand %vm1080_vm6, %vm1096_vm7  ;;  %1191 = vxpose.xlu0.b32.cont [10/16] %v1175_v33, 128  ;;  %v816_v39 = vadd.f32 %v1531_v16, %v1514_v37  ;;  %vm436_vm7 = vcmp.eq.s32.totalorder %v2171_v3, 4  ;;  %vm3117_vm6 = vcmp.lt.s32.totalorder %v2164_v0, %v2663_v45 }
 0x19d   : > { %vm1128_vm3 = vmor %vm3116_vm11, %vm1112_vm5  ;;  %vm940_vm5 = vcmp.gt.f32.partialorder %v2191_v10, %v2797_v24  ;;  %vm1100_vm12 = vcmp.lt.s32.totalorder %v2238_v18, %v2682_v5  ;;  %v1494_v46 = vsel %vm435_vm15, 1.0, %v1862_v12  ;;  %vm3118_vm9 = vcmp.gt.f32.partialorder %v2191_v10, %v2610_v44 }
 0x19e   : > { %v1560_v31 = vsel %vm1128_vm3, 1.0, %v1862_v12  ;;  %vm617_vm11 = vmand %vm585_vm14, %vm3117_vm6  ;;  %832 = vxpose.xlu1.b32.cont [15/16] %v816_v39, 128  ;;  %v1495_v48 = vsel %vm436_vm7, 1.0, %v1862_v12  ;;  %vm3120_vm15 = vcmp.eq.f32.partialorder %v2193_v11, %v2610_v44  ;;  %v456_v52 = vmul.f32 %v1491_v25, %v2186_v7 }
 0x19f   : > { %vm633_vm14 = vmor %vm569_vm10, %vm617_vm11  ;;  %v1176_v0 = vadd.f32 %v1560_v31, %v1544_v38  ;;  %vm437_vm10 = vcmp.eq.s32.totalorder %v2171_v3, 5  ;;  %v457_v28 = vmul.f32 %v1492_v26, %v397_v34  ;;  %vm3121_vm3 = vcmp.gt.f32.partialorder %v2193_v11, %v2610_v44 }
 0x1a0   : > { %vm1001_vm8 = vmor %vm3118_vm9, %vm953_vm1  ;;  %v1515_v47 = vsel %vm633_vm14, 1.0, %v1862_v12  ;;  %v402_v55 = vsub.f32 %v2145_v32, %v2181_v6  ;;  %vm438_vm7 = vcmp.eq.s32.totalorder %v2171_v3, 6  ;;  %v458_v56 = vmul.f32 %v1493_v43, %v398_v23 }
 0x1a1   : > { %v1545_v49 = vsel %vm1001_vm8, 1.0, %v1862_v12  ;;  %vm1113_vm1 = vmand %vm3120_vm15, %vm3119_vm13  ;;  %1192 = vxpose.xlu0.b32.cont [11/16] %v1176_v0, 128  ;;  %v817_v51 = vadd.f32 %v1532_v36, %v1515_v47  ;;  %v459_v41 = vmul.f32 %v1494_v46, %v399_v40  ;;  %vm3122_vm11 = vcmp.eq.f32.partialorder %v2191_v10, %v2665_v60 }
 0x1a2   : > { %vm1129_vm6 = vmor %vm3121_vm3, %vm1113_vm1  ;;  %vm3123_vm14 = vcmp.gt.f32.partialorder %v2191_v10, %v2665_v60  ;;  %vm439_vm8 = vcmp.eq.s32.totalorder %v2171_v3, 7  ;;  %v1496_v32 = vsel %vm437_vm10, 1.0, %v1862_v12  ;;  %vm3124_vm13 = vcmask 1041408  }
 0x1a3   : > { %v1561_v53 = vsel %vm1129_vm6, 1.0, %v1862_v12  ;;  %vm1002_vm9 = vmor %vm3123_vm14, %vm3122_vm11  ;;  %833 = vxpose.xlu1.b32.end [16/16] %v817_v51, 128  ;;  %v464_v7 = vsel %vm3124_vm13, %v456_v52, 0.0  ;;  %vm3125_vm15 = vcmp.lt.s32.totalorder %v2238_v18, %v2627_v50  ;;  %vm3126_vm1 = vcmp.eq.f32.partialorder %v2193_v11, %v2665_v60 }
 0x1a4   : > { %v1546_v44 = vsel %vm1002_vm9, 1.0, %v1862_v12  ;;  %vm1114_vm3 = vmand %vm3126_vm1, %vm3125_vm15  ;;  %v1177_v57 = vadd.f32 %v1561_v53, %v1545_v49  ;;  %v460_v45 = vmul.f32 %v1495_v48, %v400_v42  ;;  %vm3128_vm11 = vcmp.gt.f32.partialorder %v2193_v11, %v2665_v60  ;;  %v909_v60 = vpop.trf.xlu1 }
 0x1a5   : > { %vm3127_vm6 = vmmov %vm3124_vm13  ;;  %vm1084_vm10 = vcmp.eq.f32.partialorder %v2193_v11, %v2797_v24  ;;  %v1497_v62 = vsel %vm438_vm7, 1.0, %v1862_v12  ;;  %vm3130_vm13 = vcmp.eq.f32.partialorder %v2191_v10, %v2725_v21  ;;  %vm3131_vm15 = vcmp.gt.f32.partialorder %v2191_v10, %v2725_v21 }
 0x1a6   : > { %v465_v61 = vsel %vm3127_vm6, %v457_v28, 0.0  ;;  %vm1130_vm14 = vmor %vm3128_vm11, %vm1114_vm3  ;;  %1193 = vxpose.xlu0.b32.cont [12/16] %v1177_v57, 128  ;;  %v403_v8 = vsub.f32 %v2149_v35, %v2181_v6  ;;  %v461_v54 = vmul.f32 %v1496_v32, %v401_v27  ;;  %v1498_v20 = vsel %vm439_vm8, 1.0, %v1862_v12 }
 0x1a7   : > { %v466_v50 = vadd.f32 %v465_v61, %v464_v7  ;;  %vm3129_vm9 = vmmov %vm3127_vm6  ;;  %v1562_v4 = vsel %vm1130_vm14, 1.0, %v1862_v12  ;;  %vm1068_vm14 = vcmp.gt.f32.partialorder %v2193_v11, %v2797_v24  ;;  %v462_v35 = vmul.f32 %v1497_v62, %v402_v55 }
 0x1a8   : > { %v467_v1 = vsel %vm3129_vm9, %v458_v56, 0.0  ;;  %vm1003_vm1 = vmor %vm3131_vm15, %vm3130_vm13  ;;  %v1178_v17 = vadd.f32 %v1562_v4, %v1546_v44  ;;  %vm1101_vm9 = vcmp.lt.s32.totalorder %v2238_v18, %v2706_v14  ;;  %vm957_vm8 = vcmp.eq.f32.partialorder %v2191_v10, %v909_v60 }
 0x1a9   : > { %vm3132_vm3 = vmmov %vm3127_vm6  ;;  %v1547_v59 = vsel %vm1003_vm1, 1.0, %v1862_v12  ;;  %v468_v9 = vadd.f32 %v467_v1, %v466_v50  ;;  %vm3133_vm6 = vcmp.gt.f32.partialorder %v2193_v11, %v2725_v21  ;;  %vm1085_vm1 = vcmp.eq.f32.partialorder %v2193_v11, %v909_v60 }
 0x1aa   : > { %v469_v15 = vsel %vm3132_vm3, %v459_v41, 0.0  ;;  %vm1115_vm7 = vmand %vm1083_vm2, %vm1099_vm4  ;;  %vm941_vm4 = vcmp.gt.f32.partialorder %v2191_v10, %v909_v60  ;;  %1194 = vxpose.xlu0.b32.cont [13/16] %v1178_v17, 128  ;;  %v463_v22 = vmul.f32 %v1498_v20, %v403_v8  ;;  %v473_v29 = vsel %vm3132_vm3, %v461_v54, 0.0 }
 0x1ab   : > { %vm1131_vm11 = vmor %vm3133_vm6, %vm1115_vm7  ;;  %v470_v3 = vadd.f32 %v469_v15, %v468_v9  ;;  %v492_v14 = vsub.f32 1.0, %v2230_v13 }
 0x1ac   : > { %vm3134_vm13 = vmmov %vm3132_vm3  ;;  %v1563_v58 = vsel %vm1131_vm11, 1.0, %v1862_v12 }
 0x1ad   : > { %v471_v6 = vsel %vm3134_vm13, %v460_v45, 0.0  ;;  %vm1004_vm2 = vmor %vm940_vm5, %vm956_vm0  ;;  %v1179_v21 = vadd.f32 %v1563_v58, %v1547_v59  ;;  %vm1069_vm5 = vcmp.gt.f32.partialorder %v2193_v11, %v909_v60 }
 0x1ae   : > { %vm1116_vm15 = vmand %vm1084_vm10, %vm1100_vm12  ;;  %v1548_v19 = vsel %vm1004_vm2, 1.0, %v1862_v12  ;;  %v472_v10 = vadd.f32 %v471_v6, %v470_v3 }
 0x1af   : > { %vm1132_vm0 = vmor %vm1068_vm14, %vm1116_vm15  ;;  %1195 = vxpose.xlu0.b32.cont [14/16] %v1179_v21, 128  ;;  %vm3137_vm14 = vcmp.lt.s32.totalorder %v2168_v2, 200 }
 0x1b0   : > { %v1564_v5 = vsel %vm1132_vm0, 1.0, %v1862_v12  ;;  %vm1005_vm7 = vmor %vm941_vm4, %vm957_vm8  ;;  %v474_v30 = vadd.f32 %v473_v29, %v472_v10  ;;  %v1489_v23 = vsel %vm3137_vm14, 1.0, %v1862_v12 }
 0x1b1   : > { %vm3135_vm12 = vmmov %vm3132_vm3  ;;  %v1180_v33 = vadd.f32 %v1564_v5, %v1548_v19  ;;  %v1549_v37 = vsel %vm1005_vm7, 1.0, %v1862_v12  ;;  %vm1241_vm7 = vcmask 1040384  }
 0x1b2   : > { %v475_v16 = vsel %vm3135_vm12, %v462_v35, 0.0  ;;  %vm1117_vm10 = vmand %vm1085_vm1, %vm1101_vm9 }
 0x1b3   : > { %vm1133_vm6 = vmor %vm1069_vm5, %vm1117_vm10  ;;  %v476_v24 = vadd.f32 %v475_v16, %v474_v30  ;;  %1196 = vxpose.xlu0.b32.cont [15/16] %v1180_v33, 128  ;;  %vm1311_vm10 = vcmp.eq.s32.totalorder %v2162_v63, 2 }
 0x1b4   : > { %vm3136_vm11 = vmmov %vm3132_vm3  ;;  %v1565_v11 = vsel %vm1133_vm6, 1.0, %v1862_v12  ;;  %vm1310_vm6 = vcmp.eq.s32.totalorder %v2162_v63, 1 }
 0x1b5   : > { %v477_v34 = vsel %vm3136_vm11, %v463_v22, 0.0  ;;  %v1181_v39 = vadd.f32 %v1565_v11, %v1549_v37  ;;  %vm3138_vm9 = vmmov %vm3132_vm3  ;;  %vm1309_vm11 = vcmp.eq.s32.totalorder %v2162_v63, 0 }
 0x1b6   : > { %v478_v38 = vadd.f32 %v477_v34, %v476_v24  ;;  %vm3139_vm1 = vmmov %vm3132_vm3 }
 0x1b7   : > { %1197 = vxpose.xlu0.b32.end [16/16] %v1181_v39, 128  ;;  %vm3140_vm3 = vmmov %vm3139_vm1 }
 0x1b8   : > { %v479_v18 = vsub.f32 0.0, %v478_v38  ;;  %vm3141_vm5 = vmmov %vm3139_vm1 }
 0x1b9   : > { %vm3142_vm12 = vmmov %vm3139_vm1 }
 0x1ba   : > { %v491_v40 = vmul.f32 %v1489_v23, %v479_v18  ;;  %v480_v36 = vmul.f32 %v2230_v13, %v479_v18 }
 0x1bc   : > { %v493_v31 = vmul.f32 %v492_v14, %v491_v40  ;;  %v481_v25 = vsel %vm3138_vm9, %v480_v36, 0.0  ;;  %v1253_v14 = vld [vmem:[%s2108_s10] sm:$0x3]  ;;  %v1257_v40 = vld [vmem:[%s2119_s5] sm:$0x3] }
 0x1bd   : > { %v1254_v36 = vld [vmem:[%s2108_s10 + $0x2] sm:$0x3] }
 0x1be   : > { %495 = vst [vmem:[#allocation3] sm:$0x3] %v493_v31  }
 0x1ca   : > { %482 = vadd.xlane.f32.xlu1 %v481_v25  ;;  %v1258_v25 = vld [vmem:[%s2119_s5 + $0x2] sm:$0x3] }
 0x1d2   : > { %v420_v26 = vpop.xlane.xlu0 %419 }
 0x1d3   : > { %v421_v0 = vrot.slane %v420_v26, 4 }
 0x1d5   : > { %v422_v42 = vadd.f32 %v421_v0, %v420_v26 }
 0x1d7   : > { %v423_v43 = vrot.slane %v422_v42, 2 }
 0x1d9   : > { %v424_v46 = vadd.f32 %v423_v43, %v422_v42  ;;  %v1255_v42 = vld [vmem:[%s2108_s10 + $0x4] sm:$0x3]  ;;  %v1259_v43 = vld [vmem:[%s2119_s5 + $0x4] sm:$0x3] }
 0x1db   : > { %v425_v47 = vrot.slane %v424_v46, 1 }
 0x1dd   : > { %v426_v2 = vadd.f32 %v425_v47, %v424_v46  ;;  %v1261_v46 = vsub.f32 %v1253_v14, %v1257_v40 }
 0x1df   : > { %1578 = vpush %v426_v2  ;;  %v1262_v2 = vsub.f32 %v1254_v36, %v1258_v25  ;;  %v875_v36 = vld [vmem:[#allocation3] sm:$0x1]  ;;  %v1238_v25 = vld [vmem:[#allocation3 + $0x1] sm:$0x1] }
 0x1e3   : > { %v834_v27 = vpop.trf.xlu1 }
 0x1e7   : > { %v835_v48 = vpop.trf.xlu1 }
 0x1e8   : > { %v850_v28 = vadd.f32 %v835_v48, %v834_v27  ;;  %v1263_v48 = vsub.f32 %v1255_v42, %v1259_v43 }
 0x1eb   : > { %v836_v49 = vpop.trf.xlu1 }
 0x1ec   : > { %v851_v41 = vadd.f32 %v850_v28, %v836_v49 }
 0x1ef   : > { %v837_v51 = vpop.trf.xlu1 }
 0x1f0   : > { %v852_v7 = vadd.f32 %v851_v41, %v837_v51  ;;  %v1266_v41 = vand.u32 2147483647, %v1262_v2 }
 0x1f2   : > { %vm1270_vm2 = vcmp.lt.f32.partialorder %v1266_v41, 1.0 }
 0x1f3   : > { %v838_v52 = vpop.trf.xlu1 }
 0x1f4   : > { %v853_v45 = vadd.f32 %v852_v7, %v838_v52  ;;  %v1265_v52 = vand.u32 2147483647, %v1261_v46 }
 0x1f6   : > { %vm1269_vm13 = vcmp.lt.f32.partialorder %v1265_v52, 1.0 }
 0x1f7   : > { %v1198_v55 = vpop.trf.xlu0  ;;  %v839_v56 = vpop.trf.xlu1 }
 0x1f8   : > { %v854_v50 = vadd.f32 %v853_v45, %v839_v56  ;;  %v1260_v56 = vld [vmem:[%s2119_s5 + $0x6] sm:$0x3] }
 0x1fb   : > { %v1199_v53 = vpop.trf.xlu0  ;;  %v840_v32 = vpop.trf.xlu1 }
 0x1fc   : > { %v855_v60 = vadd.f32 %v854_v50, %v840_v32  ;;  %v1214_v3 = vadd.f32 %v1199_v53, %v1198_v55  ;;  %v1256_v55 = vld [vmem:[%s2108_s10 + $0x6] sm:$0x3]  ;;  %v1267_v32 = vand.u32 2147483647, %v1263_v48 }
 0x1fe   : > { %vm1271_vm4 = vcmp.lt.f32.partialorder %v1267_v32, 1.0 }
 0x1ff   : > { %v1200_v44 = vpop.trf.xlu0  ;;  %v841_v57 = vpop.trf.xlu1 }
 0x200   : > { %v856_v15 = vadd.f32 %v855_v60, %v841_v57  ;;  %v1215_v29 = vadd.f32 %v1214_v3, %v1200_v44  ;;  %v1264_v57 = vsub.f32 %v1256_v55, %v1260_v56 }
 0x203   : > { %v1201_v61 = vpop.trf.xlu0  ;;  %v842_v62 = vpop.trf.xlu1 }
 0x204   : > { %v857_v20 = vadd.f32 %v856_v15, %v842_v62  ;;  %v1216_v5 = vadd.f32 %v1215_v29, %v1201_v61  ;;  %v1273_v61 = vmul.f32 0.5, %v1265_v52  ;;  %v1274_v62 = vmul.f32 0.5, %v1266_v41 }
 0x206   : > { %v1277_v15 = vmul.f32 %v1273_v61, %v1265_v52 }
 0x207   : > { %v1202_v1 = vpop.trf.xlu0  ;;  %v843_v4 = vpop.trf.xlu1 }
 0x208   : > { %v858_v6 = vadd.f32 %v857_v20, %v843_v4  ;;  %v1217_v33 = vadd.f32 %v1216_v5, %v1202_v1  ;;  %v1275_v1 = vmul.f32 0.5, %v1267_v32  ;;  %v1568_v20 = vadd.f32 -0.5, %v1266_v41 }
 0x20b   : > { %v1203_v8 = vpop.trf.xlu0  ;;  %v844_v54 = vpop.trf.xlu1 }
 0x20c   : > { %v859_v21 = vadd.f32 %v858_v6, %v844_v54  ;;  %v1218_v11 = vadd.f32 %v1217_v33, %v1203_v8  ;;  %v1268_v8 = vand.u32 2147483647, %v1264_v57  ;;  %v1569_v6 = vadd.f32 -0.5, %v1267_v32 }
 0x20e   : > { %vm1272_vm8 = vcmp.lt.f32.partialorder %v1268_v8, 1.0 }
 0x20f   : > { %v1204_v59 = vpop.trf.xlu0  ;;  %v845_v17 = vpop.trf.xlu1 }
 0x210   : > { %v860_v19 = vadd.f32 %v859_v21, %v845_v17  ;;  %v1219_v39 = vadd.f32 %v1218_v11, %v1204_v59  ;;  %v1278_v59 = vmul.f32 %v1274_v62, %v1266_v41  ;;  %v1567_v17 = vadd.f32 -0.5, %v1265_v52  ;;  %s2982_s25 = spop %1578 }
 0x211   : > { %v1276_v21 = vmul.f32 0.5, %v1268_v8  ;;  %s428_s6 = smul.f32 3.0, %s2982_s25 }
 0x212   : > { %v1286_v29 = vsel %vm1270_vm2, %v1278_v59, %v1568_v20 }
 0x213   : > { %v1205_v9 = vpop.trf.xlu0  ;;  %v846_v35 = vpop.trf.xlu1  ;;  %v1290_v33 = vmul.f32 %v2230_v13, %v1286_v29 }
 0x214   : > { %v861_v16 = vadd.f32 %v860_v19, %v846_v35  ;;  %v1220_v31 = vadd.f32 %v1219_v39, %v1205_v9  ;;  %v1279_v35 = vmul.f32 %v1275_v1, %v1267_v32 }
 0x217   : > { %v1206_v58 = vpop.trf.xlu0  ;;  %v847_v22 = vpop.trf.xlu1 }
 0x218   : > { %v862_v34 = vadd.f32 %v861_v16, %v847_v22  ;;  %v1221_v26 = vadd.f32 %v1220_v31, %v1206_v58  ;;  %v1285_v22 = vsel %vm1269_vm13, %v1277_v15, %v1567_v17  ;;  %v1312_v15 = vstv %s2982_s25 }
 0x219   : > { %v1313_v59 = vsel %vm1311_vm10, %v1312_v15, 0.0 }
 0x21b   : > { %v1207_v10 = vpop.trf.xlu0  ;;  %v848_v30 = vpop.trf.xlu1 }
 0x21c   : > { %v863_v24 = vadd.f32 %v862_v34, %v848_v30  ;;  %v1222_v27 = vadd.f32 %v1221_v26, %v1207_v10  ;;  %v1287_v10 = vsel %vm1271_vm4, %v1279_v35, %v1569_v6  ;;  %v1289_v30 = vmul.f32 %v2230_v13, %v1285_v22 }
 0x21d   : > { %v1280_v34 = vmul.f32 %v1276_v21, %v1268_v8 }
 0x21f   : > { %v1208_v37 = vpop.trf.xlu0  ;;  %v849_v38 = vpop.trf.xlu1 }
 0x220   : > { %v864_v23 = vadd.f32 %v863_v24, %v849_v38  ;;  %v1223_v49 = vadd.f32 %v1222_v27, %v1208_v37  ;;  %v1570_v37 = vadd.f32 -0.5, %v1268_v8  ;;  %v871_v24 = vstv %s428_s6 }
 0x221   : > { %v1291_v38 = vmul.f32 %v2230_v13, %v1287_v10 }
 0x222   : > { %v865_v0 = vrot.slane %v864_v23, 4  ;;  %v1288_v14 = vsel %vm1272_vm8, %v1280_v34, %v1570_v37 }
 0x223   : > { %v1209_v18 = vpop.trf.xlu0  ;;  %v1296_v42 = vsel %vm3141_vm5, %v1291_v38, 0.0 }
 0x224   : > { %v866_v51 = vadd.f32 %v865_v0, %v864_v23  ;;  %v1224_v53 = vadd.f32 %v1223_v49, %v1209_v18  ;;  %v1293_v23 = vsel %vm3139_vm1, %v1289_v30, 0.0  ;;  %v1294_v18 = vsel %vm3140_vm3, %v1290_v33, 0.0 }
 0x225   : > { %v1295_v26 = vadd.f32 %v1294_v18, %v1293_v23  ;;  %v1292_v0 = vmul.f32 %v2230_v13, %v1288_v14 }
 0x226   : > { %v867_v7 = vrot.slane %v866_v51, 2 }
 0x227   : > { %v1210_v47 = vpop.trf.xlu0  ;;  %v1297_v2 = vadd.f32 %v1296_v42, %v1295_v26  ;;  %v1298_v48 = vsel %vm3142_vm12, %v1292_v0, 0.0 }
 0x228   : > { %v1225_v44 = vadd.f32 %v1224_v53, %v1210_v47  ;;  %v868_v4 = vadd.f32 %v867_v7, %v866_v51 }
 0x229   : > { %v1299_v51 = vadd.f32 %v1298_v48, %v1297_v2 }
 0x22a   : > { %v869_v58 = vrot.slane %v868_v4, 1 }
 0x22b   : > { %v1211_v28 = vpop.trf.xlu0 }
 0x22c   : > { %v1226_v50 = vadd.f32 %v1225_v44, %v1211_v28  ;;  %v870_v5 = vadd.f32 %v869_v58, %v868_v4 }
 0x22e   : > { %vm872_vm15 = vcmp.lt.f32.partialorder %v870_v5, %v871_v24 }
 0x22f   : > { %v1212_v45 = vpop.trf.xlu0  ;;  %v1533_v31 = vsel %vm872_vm15, 1.0, %v1862_v12 }
 0x230   : > { %v1227_v60 = vadd.f32 %v1226_v50, %v1212_v45  ;;  %v876_v46 = vmul.f32 %v1533_v31, %v875_v36 }
 0x233   : > { %v1213_v54 = vpop.trf.xlu0 }
 0x234   : > { %v1228_v9 = vadd.f32 %v1227_v60, %v1213_v54 }
 0x236   : > { %v1229_v3 = vrot.slane %v1228_v9, 4 }
 0x238   : > { %v1230_v19 = vadd.f32 %v1229_v3, %v1228_v9 }
 0x23a   : > { %v1231_v16 = vrot.slane %v1230_v19, 2 }
 0x23c   : > { %v1232_v11 = vadd.f32 %v1231_v16, %v1230_v19 }
 0x23e   : > { %v1233_v39 = vrot.slane %v1232_v11, 1 }
 0x240   : > { %v1234_v40 = vadd.f32 %v1233_v39, %v1232_v11 }
 0x242   : > { %vm1235_vm0 = vcmp.lt.f32.partialorder %v1234_v40, %v871_v24 }
 0x243   : > { %v1566_v43 = vsel %vm1235_vm0, 1.0, %v1862_v12 }
 0x244   : > { %v1239_v47 = vmul.f32 %v1566_v43, %v1238_v25 }
 0x246   : > { %v1240_v27 = vadd.f32 %v1239_v47, %v876_v46 }
 0x248   : > { %v1242_v49 = vsel %vm1241_vm7, %v1240_v27, 0.0 }
 0x249   : > { %1243 = vadd.xlane.f32.xlu1 %v1242_v49 }
 0x24d   : > { %1300 = vadd.xlane.f32.xlu1 %v1299_v51 }
 0x253   : > { %v483_v52 = vpop.xlane.xlu1 %482 }
 0x254   : > { %v484_v28 = vrot.slane %v483_v52, 4 }
 0x256   : > { %v485_v55 = vadd.f32 %v484_v28, %v483_v52 }
 0x258   : > { %v486_v56 = vrot.slane %v485_v55, 2 }
 0x25a   : > { %v487_v13 = vadd.f32 %v486_v56, %v485_v55 }
 0x25c   : > { %v488_v41 = vrot.slane %v487_v13, 1 }
 0x25e   : > { %v489_v53 = vadd.f32 %v488_v41, %v487_v13 }
 0x260   : > { %1580 = vpush %v489_v53 }
 0x291   : > { %s1581_s12 = spop %1580 }
 0x2d2   : > { %v1244_v12 = vpop.xlane.xlu1 %1243 }
 0x2d3   : > { %v1245_v32 = vrot.slane %v1244_v12, 4 }
 0x2d5   : > { %v1246_v7 = vadd.f32 %v1245_v32, %v1244_v12 }
 0x2d6   : > { %v1301_v44 = vpop.xlane.xlu1 %1300 }
 0x2d7   : > { %v1247_v57 = vrot.slane %v1246_v7, 2  ;;  %v1302_v45 = vrot.slane %v1301_v44, 4 }
 0x2d9   : > { %v1303_v61 = vadd.f32 %v1302_v45, %v1301_v44  ;;  %v1248_v62 = vadd.f32 %v1247_v57, %v1246_v7 }
 0x2db   : > { %v1304_v50 = vrot.slane %v1303_v61, 2  ;;  %v1249_v1 = vrot.slane %v1248_v62, 1 }
 0x2dd   : > { %v1305_v4 = vadd.f32 %v1304_v50, %v1303_v61  ;;  %v1250_v60 = vadd.f32 %v1249_v1, %v1248_v62 }
 0x2df   : > { %1582 = vpush %v1250_v60  ;;  %v1306_v8 = vrot.slane %v1305_v4, 1 }
 0x2e1   : > { %v1307_v54 = vadd.f32 %v1306_v8, %v1305_v4 }
 0x2e3   : > { %1584 = vpush %v1307_v54 }
 0x310   : > { %s1583_s1 = spop %1582 }
 0x311   : > { %s1252_s23 = sadd.f32 %s1583_s1, %s1581_s12 }
 0x313   : > { %v1314_v17 = vstv %s1252_s23 }
 0x314   : > { %v1315_v20 = vsel %vm1310_vm6, %v1314_v17, %v1313_v59  ;;  %s1585_s11 = spop %1584 }
 0x315   : > { %v1316_v9 = vstv %s1585_s11 }
 0x316   : > { %v1317_v35 = vsel %vm1309_vm11, %v1316_v9, %v1315_v20 }
 0x317   : > { %1318 = vst [vmem:[%s329_s9] sm:$0xff] %v1317_v35 }
 0x318   : > { %1794 = shalt.err (!%p1791_p0)
}
 0x319   : > { %s1795_s13 = scalar_lea.hbm %s3004_s17, 128  ;;  %s1799_s24 = scalar_lea.hbm %s3045_s4, 256 }
 0x31a   : > { %p1796_p11 = scmp.ne.s32.totalorder %s3004_s17, %s1795_s13  ;;  %p1800_p7 = scmp.lt.s32.totalorder %s3004_s17, %s3045_s4 }
 0x31b   : > { %p1801_p2 = scmp.lt.s32.totalorder %s1799_s24, %s1795_s13 }
 0x31c   : > { %p1797_p4 = pnand %p1796_p11, %p3143_p10 }
 0x31d   : > { %p1802_p8 = por %p1801_p2, %p1800_p7 }
 0x31e   : > { %p1798_p5 = pneg %p1797_p4 }
 0x320   : > { %p1803_p13 = pnand %p1802_p8, %p1798_p5 }
 0x322   : > { %1806 = shalt.err (!%p1803_p13)
}
 0x323   : > { %1594 = dma.vmem_to_hbm [thread:$0]  (%p3143_p10), %s1334_s28, 128, %s3004_s17, %s1320_s21  }
 0x324 PF: > { %s3144_s5 = sld [smem:[#allocation20_spill]]  ;;  %s1345_s25 = sand.u32 1, %s1841_s15  }
 0x325   : > { %p3146_p3 = scmp.ge.s32.totalorder %s1853_s18, 2  ;;  %s1346_s6 = scalar_lea.sflag [#allocation6], %s1345_s25 }
 0x32a   : > { %p3145_p1 = scmp.ne.s32.totalorder %s3144_s5, 0 }
 0x32c   : > { %p1610_p9 = pnand %p3146_p3, %p3145_p1 }
 0x32e   : > { %p1611_p6 = pneg %p1610_p9 }
 0x330   : > { %1836 = dma.done.wait (%p1611_p6), %s1346_s6, 128  }
 0x331   : > { %1838 = vsyncadd (%p1611_p6), %s1346_s6, 4294967168  ;;  %s3147_s18 = sld [smem:[#allocation18_spill]]  ;;  %s3150_s15 = smov %s1845_s16 }
 0x332   : > { %s3148_s12 = sld [smem:[#allocation17_spill]] }
 0x333   : > { %s3149_s17 = sld [smem:[#allocation19_spill]] }
 0x337   : > { %p23_p12 = scmp.ge.s32.totalorder %s3147_s18, 4  }
 0x338   : > { %s3151_s16 = smov %s3148_s12 }
 0x339   :  { %25 = sbr.rel (!%p23_p12) target bundleno = 12 (0xc), region = 120 }
 0x33e   :  { %1351 = vsyncpa [#allocation5], 1 }
 0x33f   :  { %1353 = vsyncpa [#allocation5 + $0x1], 1 }
 0x340   :  { %1354 = vsyncpa [#allocation8], 1 }
 0x341   :  { %1356 = vsyncpa [#allocation8 + $0x1], 1 }
 0x342   :  { %1357 = vsyncpa [#allocation11], 1 }
 0x343   :  { %1359 = vsyncpa [#allocation11 + $0x1], 1 }
 0x344   :  { %1360 = vsyncpa [#allocation6], 1 }
 0x345   :  { %1362 = vsyncpa [#allocation6 + $0x1], 1 }

</bundles_post_ra>
